<compile_context>
chip_gen: v7x
topology: tpu7x:2x2x1
jax: 0.10.0
libtpu: 0.0.40
codegen_flags: <defaults>
</compile_context>

<pallas_src>
import functools
import math

import jax
import jax.numpy as jnp
from jax.experimental import pallas as pl
from jax.experimental.pallas import tpu as pltpu

HIDDEN = 16   # feature channels of the ATUNet stand-in
C_IN = 12     # BaseModule input channels
C_OUT = 6     # normal / color output channels


def _round8(c):
    return ((c + 7) // 8) * 8


# ---------------------------------------------------------------------------
# Fused BaseModule kernel (one batch element per grid step)
# ---------------------------------------------------------------------------
def _fused_base_module_kernel(
    x_ref, mask_ref,
    w1n_ref, b1n_ref, w2n_ref, b2n_ref,
    w1cx_ref, w1cy_ref, b1c_ref, w2c_ref, b2c_ref,
    yc_ref, yn_ref, fc_ref, fn_ref,
    xpat, hpat, ypat, fnp, ynp, fcp,
    *, H, W,
):
    Wp2 = W + 2
    S = H * Wp2                      # flattened "padded-width" spatial grid
    mask = mask_ref[...]             # (1, S): 1.0 on valid columns, 0.0 on the halo

    # The halo / pad-channel rows of the re-padded intermediate images must be exactly
    # zero (scratch VMEM is uninitialized and persists across grid steps).  The im2col
    # patch buffers are fully overwritten every step, so they need no zero-init.
    fnp[...] = jnp.zeros_like(fnp)
    ynp[...] = jnp.zeros_like(ynp)
    fcp[...] = jnp.zeros_like(fcp)

    def fill_patch(pat_ref, src_ref):
        # im2col on the padded-width grid: tap (ky, kx) of the flat zero-padded image
        # is the contiguous lane window starting at ky*(W+2)+kx.  src_ref carries a
        # multiple-of-8 channel count, so every store is a full aligned sublane block.
        cpad = src_ref.shape[0]
        t = 0
        for ky in range(3):
            for kx in range(3):
                off = ky * Wp2 + kx
                pat_ref[t * cpad:(t + 1) * cpad, :] = src_ref[:, off:off + S]
                t += 1

    def conv(pat_ref, w_ref, b_ref, relu):
        # (Cout, 9*Cpad) x (9*Cpad, S) -> (Cout, S), f32 accumulation on the MXU.
        acc = jnp.dot(w_ref[...], pat_ref[...], preferred_element_type=jnp.float32)
        acc = acc + b_ref[...]
        if relu:
            acc = jnp.maximum(acc, 0.0)
        return acc * mask            # zero the off-grid (halo) columns

    def repad(dst_ref, val):
        # Store a padded-width-grid activation back as a zero-padded flat image:
        # one contiguous lane-window store; the halo (and any pad rows) stays zero.
        c = val.shape[0]
        dst_ref[0:c, Wp2 + 1:Wp2 + 1 + S] = val

    # ---------------- img2normal ----------------
    fill_patch(xpat, x_ref)                                 # x is channel-padded to 16
    f_n = conv(xpat, w1n_ref, b1n_ref, relu=True)           # (HIDDEN, S)
    fn_ref[...] = f_n
    repad(fnp, f_n)
    fill_patch(hpat, fnp)
    y_n = conv(hpat, w2n_ref, b2n_ref, relu=False)          # (C_OUT, S)
    yn_ref[...] = y_n

    # ---------------- img2img -------------------
    # torch.cat((x, y_n), dim=1) folded into two matmuls on one f32 accumulator;
    # the x patch is reused from the first network.
    repad(ynp, y_n)
    fill_patch(ypat, ynp)
    acc = jnp.dot(w1cx_ref[...], xpat[...], preferred_element_type=jnp.float32)
    acc = acc + jnp.dot(w1cy_ref[...], ypat[...], preferred_element_type=jnp.float32)
    f_c = jnp.maximum(acc + b1c_ref[...], 0.0) * mask       # (HIDDEN, S)
    fc_ref[...] = f_c
    repad(fcp, f_c)
    fill_patch(hpat, fcp)
    y_c = conv(hpat, w2c_ref, b2c_ref, relu=False)          # (C_OUT, S)
    yc_ref[...] = y_c


# ---------------------------------------------------------------------------
# Host wrapper
# ---------------------------------------------------------------------------
def _prep_weight(w_oihw, cpad):
    # (Cout, Cin, 3, 3) -> (Cout, 9*cpad), rows ordered (ky, kx, ci), ci zero-padded
    # to cpad so it matches the channel-padded im2col tap blocks.
    co, ci = w_oihw.shape[0], w_oihw.shape[1]
    wt = jnp.transpose(w_oihw, (0, 2, 3, 1)).astype(jnp.float32)   # (Cout, 3, 3, Cin)
    wt = jnp.pad(wt, ((0, 0), (0, 0), (0, 0), (0, cpad - ci)))
    return wt.reshape(co, 9 * cpad)


def base_module_forward(params, x):
    """x: (N, 12, H, W) NCHW.  Returns BaseModule's output dict (NCHW, like PyTorch)."""
    N, c_in, H, W = x.shape
    assert c_in == C_IN
    Wp2 = W + 2
    S = H * Wp2                      # padded-width spatial grid (lane axis)
    L = (H + 3) * Wp2                # flat padded image (1 top + 2 bottom pad rows)
    xc_pad = _round8(C_IN)           # 16
    hc_pad = _round8(HIDDEN)         # 16
    yc_pad = _round8(C_OUT)          # 8

    # Single cheap zero-pad (channels to a multiple of 8 + spatial halo) and a free
    # reshape for the whole fused module.
    x_flat = jnp.pad(x.astype(jnp.float32),
                     ((0, 0), (0, xc_pad - C_IN), (1, 2), (1, 1))).reshape(N, xc_pad, L)
    # Valid-column mask of the padded-width grid.
    mask = (jnp.arange(S, dtype=jnp.int32) % Wp2 < W).astype(jnp.float32).reshape(1, S)

    p_n, p_c = params["img2normal"], params["img2img"]
    w1n = _prep_weight(p_n["w1"], xc_pad)                # (HIDDEN, 144)
    w2n = _prep_weight(p_n["w2"], hc_pad)                # (C_OUT, 144)
    w1cx = _prep_weight(p_c["w1"][:, :C_IN], xc_pad)     # (HIDDEN, 144)  x part
    w1cy = _prep_weight(p_c["w1"][:, C_IN:], yc_pad)     # (HIDDEN, 72)   y_n part
    w2c = _prep_weight(p_c["w2"], hc_pad)                # (C_OUT, 144)
    b1n = p_n["b1"].reshape(-1, 1).astype(jnp.float32)
    b2n = p_n["b2"].reshape(-1, 1).astype(jnp.float32)
    b1c = p_c["b1"].reshape(-1, 1).astype(jnp.float32)
    b2c = p_c["b2"].reshape(-1, 1).astype(jnp.float32)

    kernel = functools.partial(_fused_base_module_kernel, H=H, W=W)

    const = lambda n: (0, 0)
    per_n = lambda n: (n, 0, 0)

    y_c, y_n, f_c, f_n = pl.pallas_call(
        kernel,
        out_shape=(
            jax.ShapeDtypeStruct((N, C_OUT, S), jnp.float32),    # y_c
            jax.ShapeDtypeStruct((N, C_OUT, S), jnp.float32),    # y_n
            jax.ShapeDtypeStruct((N, HIDDEN, S), jnp.float32),   # f_c
            jax.ShapeDtypeStruct((N, HIDDEN, S), jnp.float32),   # f_n
        ),
        grid=(N,),
        in_specs=[
            pl.BlockSpec((None, xc_pad, L), per_n),      # x (flat, zero-padded, ch-padded)
            pl.BlockSpec((1, S), const),                 # valid-column mask
            pl.BlockSpec((HIDDEN, 9 * xc_pad), const),   # w1 img2normal
            pl.BlockSpec((HIDDEN, 1), const),            # b1 img2normal
            pl.BlockSpec((C_OUT, 9 * hc_pad), const),    # w2 img2normal
            pl.BlockSpec((C_OUT, 1), const),             # b2 img2normal
            pl.BlockSpec((HIDDEN, 9 * xc_pad), const),   # w1 img2img (x part)
            pl.BlockSpec((HIDDEN, 9 * yc_pad), const),   # w1 img2img (y_n part)
            pl.BlockSpec((HIDDEN, 1), const),            # b1 img2img
            pl.BlockSpec((C_OUT, 9 * hc_pad), const),    # w2 img2img
            pl.BlockSpec((C_OUT, 1), const),             # b2 img2img
        ],
        out_specs=(
            pl.BlockSpec((None, C_OUT, S), per_n),
            pl.BlockSpec((None, C_OUT, S), per_n),
            pl.BlockSpec((None, HIDDEN, S), per_n),
            pl.BlockSpec((None, HIDDEN, S), per_n),
        ),
        scratch_shapes=[
            pltpu.VMEM((9 * xc_pad, S), jnp.float32),    # x im2col patch (reused)
            pltpu.VMEM((9 * hc_pad, S), jnp.float32),    # hidden im2col patch
            pltpu.VMEM((9 * yc_pad, S), jnp.float32),    # y_n im2col patch
            pltpu.VMEM((hc_pad, L), jnp.float32),        # re-padded f_n
            pltpu.VMEM((yc_pad, L), jnp.float32),        # re-padded y_n (rows 6,7 zero)
            pltpu.VMEM((hc_pad, L), jnp.float32),        # re-padded f_c
        ],
        compiler_params=pltpu.CompilerParams(
            dimension_semantics=("parallel",)),
    )(x_flat, mask, w1n, b1n, w2n, b2n, w1cx, w1cy, b1c, w2c, b2c)

    def densify(o, c):
        # (N, C, H*(W+2)) -> (N, C, H, W): free reshape + drop the two halo columns.
        return o.reshape(N, c, H, Wp2)[:, :, :, :W]

    return {
        "pred_color": densify(y_c, C_OUT),
        "pred_normal": densify(y_n, C_OUT),
        "pred_color_feature": densify(f_c, HIDDEN),
        "pred_normal_feature": densify(f_n, HIDDEN),
    }


# ---------------------------------------------------------------------------
# Parameters (weight_init_basic) and a pure-JAX reference for validation
# ---------------------------------------------------------------------------
def init_atunet_params(key, in_ch, out_ch, hidden=HIDDEN):
    k1, k2 = jax.random.split(key)
    std1 = math.sqrt(2.0 / (3 * 3 * hidden))
    std2 = math.sqrt(2.0 / (3 * 3 * out_ch))
    return {
        "w1": std1 * jax.random.normal(k1, (hidden, in_ch, 3, 3), jnp.float32),
        "b1": jnp.zeros((hidden,), jnp.float32),
        "w2": std2 * jax.random.normal(k2, (out_ch, hidden, 3, 3), jnp.float32),
        "b2": jnp.zeros((out_ch,), jnp.float32),
    }


def init_base_module_params(key):
    k_n, k_c = jax.random.split(key)
    return {
        "img2normal": init_atunet_params(k_n, in_ch=C_IN, out_ch=C_OUT),
        "img2img": init_atunet_params(k_c, in_ch=C_IN + C_OUT, out_ch=C_OUT),
    }


def _conv3x3_ref(x, w, b):
    out = jax.lax.conv_general_dilated(
        x, w, window_strides=(1, 1), padding=((1, 1), (1, 1)),
        dimension_numbers=("NCHW", "OIHW", "NCHW"),
        precision=jax.lax.Precision.HIGHEST)
    return out + b.reshape(1, -1, 1, 1)


def base_module_reference(params, x):
    p_n, p_c = params["img2normal"], params["img2img"]
    f_n = jax.nn.relu(_conv3x3_ref(x, p_n["w1"], p_n["b1"]))
    y_n = _conv3x3_ref(f_n, p_n["w2"], p_n["b2"])
    cat = jnp.concatenate((x, y_n), axis=1)
    f_c = jax.nn.relu(_conv3x3_ref(cat, p_c["w1"], p_c["b1"]))
    y_c = _conv3x3_ref(f_c, p_c["w2"], p_c["b2"])
    return {"pred_color": y_c, "pred_normal": y_n,
            "pred_color_feature": f_c, "pred_normal_feature": f_n}


# ---------------------------------------------------------------------------
if __name__ == "__main__":
    key = jax.random.PRNGKey(0)
    k_params, k_x = jax.random.split(key)

    params = init_base_module_params(k_params)
    x = jax.random.normal(k_x, (2, C_IN, 16, 16), jnp.float32)  # N=2, C=12, H=W=16

    fwd = jax.jit(base_module_forward)
    out = fwd(params, x)
    out = jax.tree_util.tree_map(jax.block_until_ready, out)

    assert out["pred_normal"].shape == (2, C_OUT, 16, 16)
    assert out["pred_color"].shape == (2, C_OUT, 16, 16)
    assert out["pred_normal_feature"].shape == (2, HIDDEN, 16, 16)
    assert out["pred_color_feature"].shape == (2, HIDDEN, 16, 16)
    assert all(bool(jnp.all(jnp.isfinite(v))) for v in out.values())

    ref = base_module_reference(params, x)
    for name in out:
        err = float(jnp.max(jnp.abs(out[name] - ref[name])))
        assert err < 5e-2, f"{name}: max abs err {err}"

    print("KERNEL_OK")
</pallas_src>

<mosaic_0001>
module attributes {stable_mosaic.version = 11 : i64} {
  func.func @_fused_base_module_kernel(%arg0: i32, %arg1: memref<1x16x342xf32, #tpu.memory_space<vmem>>, %arg2: memref<1x288xf32, #tpu.memory_space<vmem>>, %arg3: memref<16x144xf32, #tpu.memory_space<vmem>>, %arg4: memref<16x1xf32, #tpu.memory_space<vmem>>, %arg5: memref<6x144xf32, #tpu.memory_space<vmem>>, %arg6: memref<6x1xf32, #tpu.memory_space<vmem>>, %arg7: memref<16x144xf32, #tpu.memory_space<vmem>>, %arg8: memref<16x72xf32, #tpu.memory_space<vmem>>, %arg9: memref<16x1xf32, #tpu.memory_space<vmem>>, %arg10: memref<6x144xf32, #tpu.memory_space<vmem>>, %arg11: memref<6x1xf32, #tpu.memory_space<vmem>>, %arg12: memref<1x6x288xf32, #tpu.memory_space<vmem>>, %arg13: memref<1x6x288xf32, #tpu.memory_space<vmem>>, %arg14: memref<1x16x288xf32, #tpu.memory_space<vmem>>, %arg15: memref<1x16x288xf32, #tpu.memory_space<vmem>>, %arg16: memref<144x288xf32, #tpu.memory_space<vmem>>, %arg17: memref<144x288xf32, #tpu.memory_space<vmem>>, %arg18: memref<72x288xf32, #tpu.memory_space<vmem>>, %arg19: memref<16x342xf32, #tpu.memory_space<vmem>>, %arg20: memref<8x342xf32, #tpu.memory_space<vmem>>, %arg21: memref<16x342xf32, #tpu.memory_space<vmem>>) attributes {dimension_semantics = [#tpu.dimension_semantics<parallel>], iteration_bounds = array<i64: 2>, scalar_prefetch = 0 : i64, scratch_operands = 6 : i64, tpu.core_type = #tpu.core_type<tc>, window_params = [{transform_indices = @transform_0, window_bounds = array<i64: 1, 16, 342>}, {pipeline_mode = #tpu.pipeline_mode<synchronous>, transform_indices = @transform_1, window_bounds = array<i64: 1, 288>}, {pipeline_mode = #tpu.pipeline_mode<synchronous>, transform_indices = @transform_2, window_bounds = array<i64: 16, 144>}, {pipeline_mode = #tpu.pipeline_mode<synchronous>, transform_indices = @transform_3, window_bounds = array<i64: 16, 1>}, {pipeline_mode = #tpu.pipeline_mode<synchronous>, transform_indices = @transform_4, window_bounds = array<i64: 6, 144>}, {pipeline_mode = #tpu.pipeline_mode<synchronous>, transform_indices = @transform_5, window_bounds = array<i64: 6, 1>}, {pipeline_mode = #tpu.pipeline_mode<synchronous>, transform_indices = @transform_6, window_bounds = array<i64: 16, 144>}, {pipeline_mode = #tpu.pipeline_mode<synchronous>, transform_indices = @transform_7, window_bounds = array<i64: 16, 72>}, {pipeline_mode = #tpu.pipeline_mode<synchronous>, transform_indices = @transform_8, window_bounds = array<i64: 16, 1>}, {pipeline_mode = #tpu.pipeline_mode<synchronous>, transform_indices = @transform_9, window_bounds = array<i64: 6, 144>}, {pipeline_mode = #tpu.pipeline_mode<synchronous>, transform_indices = @transform_10, window_bounds = array<i64: 6, 1>}, {transform_indices = @transform_11, window_bounds = array<i64: 1, 6, 288>}, {transform_indices = @transform_12, window_bounds = array<i64: 1, 6, 288>}, {transform_indices = @transform_13, window_bounds = array<i64: 1, 16, 288>}, {transform_indices = @transform_14, window_bounds = array<i64: 1, 16, 288>}]} {
    %c0 = arith.constant 0 : index
    %c0_0 = arith.constant 0 : index
    %0 = vector.load %arg2[%c0, %c0_0] : memref<1x288xf32, #tpu.memory_space<vmem>>, vector<1x288xf32>
    %cst = arith.constant 0.000000e+00 : f32
    %1 = vector.broadcast %cst : f32 to vector<16x342xf32>
    %c0_1 = arith.constant 0 : index
    %c0_2 = arith.constant 0 : index
    %2 = vector.load %arg19[%c0_1, %c0_2] : memref<16x342xf32, #tpu.memory_space<vmem>>, vector<16x342xf32>
    tpu.vector_store %arg19[%c0_1, %c0_2], %1 {strides = array<i32>} : memref<16x342xf32, #tpu.memory_space<vmem>>, vector<16x342xf32>,
    %cst_3 = arith.constant 0.000000e+00 : f32
    %3 = vector.broadcast %cst_3 : f32 to vector<8x342xf32>
    %c0_4 = arith.constant 0 : index
    %c0_5 = arith.constant 0 : index
    %4 = vector.load %arg20[%c0_4, %c0_5] : memref<8x342xf32, #tpu.memory_space<vmem>>, vector<8x342xf32>
    tpu.vector_store %arg20[%c0_4, %c0_5], %3 {strides = array<i32>} : memref<8x342xf32, #tpu.memory_space<vmem>>, vector<8x342xf32>,
    %cst_6 = arith.constant 0.000000e+00 : f32
    %5 = vector.broadcast %cst_6 : f32 to vector<16x342xf32>
    %c0_7 = arith.constant 0 : index
    %c0_8 = arith.constant 0 : index
    %6 = vector.load %arg21[%c0_7, %c0_8] : memref<16x342xf32, #tpu.memory_space<vmem>>, vector<16x342xf32>
    tpu.vector_store %arg21[%c0_7, %c0_8], %5 {strides = array<i32>} : memref<16x342xf32, #tpu.memory_space<vmem>>, vector<16x342xf32>,
    %c0_9 = arith.constant 0 : index
    %c0_10 = arith.constant 0 : index
    %c0_11 = arith.constant 0 : index
    %7 = vector.load %arg1[%c0_9, %c0_10, %c0_11] : memref<1x16x342xf32, #tpu.memory_space<vmem>>, vector<1x16x288xf32>
    %8 = vector.shape_cast %7 : vector<1x16x288xf32> to vector<16x288xf32>
    %c0_12 = arith.constant 0 : index
    %c0_13 = arith.constant 0 : index
    %9 = vector.load %arg16[%c0_12, %c0_13] : memref<144x288xf32, #tpu.memory_space<vmem>>, vector<16x288xf32>
    tpu.vector_store %arg16[%c0_12, %c0_13], %8 {strides = array<i32>} : memref<144x288xf32, #tpu.memory_space<vmem>>, vector<16x288xf32>,
    %c0_14 = arith.constant 0 : index
    %c0_15 = arith.constant 0 : index
    %c1 = arith.constant 1 : index
    %10 = vector.load %arg1[%c0_14, %c0_15, %c1] : memref<1x16x342xf32, #tpu.memory_space<vmem>>, vector<1x16x288xf32>
    %11 = vector.shape_cast %10 : vector<1x16x288xf32> to vector<16x288xf32>
    %c16 = arith.constant 16 : index
    %c0_16 = arith.constant 0 : index
    %12 = vector.load %arg16[%c16, %c0_16] : memref<144x288xf32, #tpu.memory_space<vmem>>, vector<16x288xf32>
    tpu.vector_store %arg16[%c16, %c0_16], %11 {strides = array<i32>} : memref<144x288xf32, #tpu.memory_space<vmem>>, vector<16x288xf32>,
    %c0_17 = arith.constant 0 : index
    %c0_18 = arith.constant 0 : index
    %c2 = arith.constant 2 : index
    %13 = vector.load %arg1[%c0_17, %c0_18, %c2] : memref<1x16x342xf32, #tpu.memory_space<vmem>>, vector<1x16x288xf32>
    %14 = vector.shape_cast %13 : vector<1x16x288xf32> to vector<16x288xf32>
    %c32 = arith.constant 32 : index
    %c0_19 = arith.constant 0 : index
    %15 = vector.load %arg16[%c32, %c0_19] : memref<144x288xf32, #tpu.memory_space<vmem>>, vector<16x288xf32>
    tpu.vector_store %arg16[%c32, %c0_19], %14 {strides = array<i32>} : memref<144x288xf32, #tpu.memory_space<vmem>>, vector<16x288xf32>,
    %c0_20 = arith.constant 0 : index
    %c0_21 = arith.constant 0 : index
    %c18 = arith.constant 18 : index
    %16 = vector.load %arg1[%c0_20, %c0_21, %c18] : memref<1x16x342xf32, #tpu.memory_space<vmem>>, vector<1x16x288xf32>
    %17 = vector.shape_cast %16 : vector<1x16x288xf32> to vector<16x288xf32>
    %c48 = arith.constant 48 : index
    %c0_22 = arith.constant 0 : index
    %18 = vector.load %arg16[%c48, %c0_22] : memref<144x288xf32, #tpu.memory_space<vmem>>, vector<16x288xf32>
    tpu.vector_store %arg16[%c48, %c0_22], %17 {strides = array<i32>} : memref<144x288xf32, #tpu.memory_space<vmem>>, vector<16x288xf32>,
    %c0_23 = arith.constant 0 : index
    %c0_24 = arith.constant 0 : index
    %c19 = arith.constant 19 : index
    %19 = vector.load %arg1[%c0_23, %c0_24, %c19] : memref<1x16x342xf32, #tpu.memory_space<vmem>>, vector<1x16x288xf32>
    %20 = vector.shape_cast %19 : vector<1x16x288xf32> to vector<16x288xf32>
    %c64 = arith.constant 64 : index
    %c0_25 = arith.constant 0 : index
    %21 = vector.load %arg16[%c64, %c0_25] : memref<144x288xf32, #tpu.memory_space<vmem>>, vector<16x288xf32>
    tpu.vector_store %arg16[%c64, %c0_25], %20 {strides = array<i32>} : memref<144x288xf32, #tpu.memory_space<vmem>>, vector<16x288xf32>,
    %c0_26 = arith.constant 0 : index
    %c0_27 = arith.constant 0 : index
    %c20 = arith.constant 20 : index
    %22 = vector.load %arg1[%c0_26, %c0_27, %c20] : memref<1x16x342xf32, #tpu.memory_space<vmem>>, vector<1x16x288xf32>
    %23 = vector.shape_cast %22 : vector<1x16x288xf32> to vector<16x288xf32>
    %c80 = arith.constant 80 : index
    %c0_28 = arith.constant 0 : index
    %24 = vector.load %arg16[%c80, %c0_28] : memref<144x288xf32, #tpu.memory_space<vmem>>, vector<16x288xf32>
    tpu.vector_store %arg16[%c80, %c0_28], %23 {strides = array<i32>} : memref<144x288xf32, #tpu.memory_space<vmem>>, vector<16x288xf32>,
    %c0_29 = arith.constant 0 : index
    %c0_30 = arith.constant 0 : index
    %c36 = arith.constant 36 : index
    %25 = vector.load %arg1[%c0_29, %c0_30, %c36] : memref<1x16x342xf32, #tpu.memory_space<vmem>>, vector<1x16x288xf32>
    %26 = vector.shape_cast %25 : vector<1x16x288xf32> to vector<16x288xf32>
    %c96 = arith.constant 96 : index
    %c0_31 = arith.constant 0 : index
    %27 = vector.load %arg16[%c96, %c0_31] : memref<144x288xf32, #tpu.memory_space<vmem>>, vector<16x288xf32>
    tpu.vector_store %arg16[%c96, %c0_31], %26 {strides = array<i32>} : memref<144x288xf32, #tpu.memory_space<vmem>>, vector<16x288xf32>,
    %c0_32 = arith.constant 0 : index
    %c0_33 = arith.constant 0 : index
    %c37 = arith.constant 37 : index
    %28 = vector.load %arg1[%c0_32, %c0_33, %c37] : memref<1x16x342xf32, #tpu.memory_space<vmem>>, vector<1x16x288xf32>
    %29 = vector.shape_cast %28 : vector<1x16x288xf32> to vector<16x288xf32>
    %c112 = arith.constant 112 : index
    %c0_34 = arith.constant 0 : index
    %30 = vector.load %arg16[%c112, %c0_34] : memref<144x288xf32, #tpu.memory_space<vmem>>, vector<16x288xf32>
    tpu.vector_store %arg16[%c112, %c0_34], %29 {strides = array<i32>} : memref<144x288xf32, #tpu.memory_space<vmem>>, vector<16x288xf32>,
    %c0_35 = arith.constant 0 : index
    %c0_36 = arith.constant 0 : index
    %c38 = arith.constant 38 : index
    %31 = vector.load %arg1[%c0_35, %c0_36, %c38] : memref<1x16x342xf32, #tpu.memory_space<vmem>>, vector<1x16x288xf32>
    %32 = vector.shape_cast %31 : vector<1x16x288xf32> to vector<16x288xf32>
    %c128 = arith.constant 128 : index
    %c0_37 = arith.constant 0 : index
    %33 = vector.load %arg16[%c128, %c0_37] : memref<144x288xf32, #tpu.memory_space<vmem>>, vector<16x288xf32>
    tpu.vector_store %arg16[%c128, %c0_37], %32 {strides = array<i32>} : memref<144x288xf32, #tpu.memory_space<vmem>>, vector<16x288xf32>,
    %c0_38 = arith.constant 0 : index
    %c0_39 = arith.constant 0 : index
    %34 = vector.load %arg3[%c0_38, %c0_39] : memref<16x144xf32, #tpu.memory_space<vmem>>, vector<16x144xf32>
    %c0_40 = arith.constant 0 : index
    %c0_41 = arith.constant 0 : index
    %35 = vector.load %arg16[%c0_40, %c0_41] : memref<144x288xf32, #tpu.memory_space<vmem>>, vector<144x288xf32>
    %cst_42 = arith.constant dense<0.000000e+00> : vector<16x288xf32>
    %36 = tpu.matmul %34, %35, %cst_42 {dimension_numbers = #tpu.dot_dimension_numbers<[1], [0], [0], [1], [0, 0, 1, 1], [], []>} : vector<16x144xf32>, vector<144x288xf32>, vector<16x288xf32> -> vector<16x288xf32>
    %c0_43 = arith.constant 0 : index
    %c0_44 = arith.constant 0 : index
    %37 = vector.load %arg4[%c0_43, %c0_44] : memref<16x1xf32, #tpu.memory_space<vmem>>, vector<16x1xf32>
    %38 = vector.broadcast %37 : vector<16x1xf32> to vector<16x288xf32>
    %39 = arith.addf %36, %38 : vector<16x288xf32>
    %cst_45 = arith.constant 0.000000e+00 : f32
    %40 = vector.broadcast %cst_45 : f32 to vector<16x288xf32>
    %41 = arith.maximumf %39, %40 : vector<16x288xf32>
    %42 = vector.broadcast %0 : vector<1x288xf32> to vector<16x288xf32>
    %43 = arith.mulf %41, %42 : vector<16x288xf32>
    %c0_46 = arith.constant 0 : index
    %c0_47 = arith.constant 0 : index
    %c0_48 = arith.constant 0 : index
    %44 = vector.load %arg15[%c0_46, %c0_47, %c0_48] : memref<1x16x288xf32, #tpu.memory_space<vmem>>, vector<1x16x288xf32>
    %45 = vector.shape_cast %44 : vector<1x16x288xf32> to vector<16x288xf32>
    %46 = vector.shape_cast %43 : vector<16x288xf32> to vector<1x16x288xf32>
    tpu.vector_store %arg15[%c0_46, %c0_47, %c0_48], %46 {strides = array<i32>} : memref<1x16x288xf32, #tpu.memory_space<vmem>>, vector<1x16x288xf32>,
    %c0_49 = arith.constant 0 : index
    %c19_50 = arith.constant 19 : index
    %47 = vector.load %arg19[%c0_49, %c19_50] : memref<16x342xf32, #tpu.memory_space<vmem>>, vector<16x288xf32>
    tpu.vector_store %arg19[%c0_49, %c19_50], %43 {strides = array<i32>} : memref<16x342xf32, #tpu.memory_space<vmem>>, vector<16x288xf32>,
    %c0_51 = arith.constant 0 : index
    %c0_52 = arith.constant 0 : index
    %48 = vector.load %arg19[%c0_51, %c0_52] : memref<16x342xf32, #tpu.memory_space<vmem>>, vector<16x288xf32>
    %c0_53 = arith.constant 0 : index
    %c0_54 = arith.constant 0 : index
    %49 = vector.load %arg17[%c0_53, %c0_54] : memref<144x288xf32, #tpu.memory_space<vmem>>, vector<16x288xf32>
    tpu.vector_store %arg17[%c0_53, %c0_54], %48 {strides = array<i32>} : memref<144x288xf32, #tpu.memory_space<vmem>>, vector<16x288xf32>,
    %c0_55 = arith.constant 0 : index
    %c1_56 = arith.constant 1 : index
    %50 = vector.load %arg19[%c0_55, %c1_56] : memref<16x342xf32, #tpu.memory_space<vmem>>, vector<16x288xf32>
    %c16_57 = arith.constant 16 : index
    %c0_58 = arith.constant 0 : index
    %51 = vector.load %arg17[%c16_57, %c0_58] : memref<144x288xf32, #tpu.memory_space<vmem>>, vector<16x288xf32>
    tpu.vector_store %arg17[%c16_57, %c0_58], %50 {strides = array<i32>} : memref<144x288xf32, #tpu.memory_space<vmem>>, vector<16x288xf32>,
    %c0_59 = arith.constant 0 : index
    %c2_60 = arith.constant 2 : index
    %52 = vector.load %arg19[%c0_59, %c2_60] : memref<16x342xf32, #tpu.memory_space<vmem>>, vector<16x288xf32>
    %c32_61 = arith.constant 32 : index
    %c0_62 = arith.constant 0 : index
    %53 = vector.load %arg17[%c32_61, %c0_62] : memref<144x288xf32, #tpu.memory_space<vmem>>, vector<16x288xf32>
    tpu.vector_store %arg17[%c32_61, %c0_62], %52 {strides = array<i32>} : memref<144x288xf32, #tpu.memory_space<vmem>>, vector<16x288xf32>,
    %c0_63 = arith.constant 0 : index
    %c18_64 = arith.constant 18 : index
    %54 = vector.load %arg19[%c0_63, %c18_64] : memref<16x342xf32, #tpu.memory_space<vmem>>, vector<16x288xf32>
    %c48_65 = arith.constant 48 : index
    %c0_66 = arith.constant 0 : index
    %55 = vector.load %arg17[%c48_65, %c0_66] : memref<144x288xf32, #tpu.memory_space<vmem>>, vector<16x288xf32>
    tpu.vector_store %arg17[%c48_65, %c0_66], %54 {strides = array<i32>} : memref<144x288xf32, #tpu.memory_space<vmem>>, vector<16x288xf32>,
    %c0_67 = arith.constant 0 : index
    %c19_68 = arith.constant 19 : index
    %56 = vector.load %arg19[%c0_67, %c19_68] : memref<16x342xf32, #tpu.memory_space<vmem>>, vector<16x288xf32>
    %c64_69 = arith.constant 64 : index
    %c0_70 = arith.constant 0 : index
    %57 = vector.load %arg17[%c64_69, %c0_70] : memref<144x288xf32, #tpu.memory_space<vmem>>, vector<16x288xf32>
    tpu.vector_store %arg17[%c64_69, %c0_70], %56 {strides = array<i32>} : memref<144x288xf32, #tpu.memory_space<vmem>>, vector<16x288xf32>,
    %c0_71 = arith.constant 0 : index
    %c20_72 = arith.constant 20 : index
    %58 = vector.load %arg19[%c0_71, %c20_72] : memref<16x342xf32, #tpu.memory_space<vmem>>, vector<16x288xf32>
    %c80_73 = arith.constant 80 : index
    %c0_74 = arith.constant 0 : index
    %59 = vector.load %arg17[%c80_73, %c0_74] : memref<144x288xf32, #tpu.memory_space<vmem>>, vector<16x288xf32>
    tpu.vector_store %arg17[%c80_73, %c0_74], %58 {strides = array<i32>} : memref<144x288xf32, #tpu.memory_space<vmem>>, vector<16x288xf32>,
    %c0_75 = arith.constant 0 : index
    %c36_76 = arith.constant 36 : index
    %60 = vector.load %arg19[%c0_75, %c36_76] : memref<16x342xf32, #tpu.memory_space<vmem>>, vector<16x288xf32>
    %c96_77 = arith.constant 96 : index
    %c0_78 = arith.constant 0 : index
    %61 = vector.load %arg17[%c96_77, %c0_78] : memref<144x288xf32, #tpu.memory_space<vmem>>, vector<16x288xf32>
    tpu.vector_store %arg17[%c96_77, %c0_78], %60 {strides = array<i32>} : memref<144x288xf32, #tpu.memory_space<vmem>>, vector<16x288xf32>,
    %c0_79 = arith.constant 0 : index
    %c37_80 = arith.constant 37 : index
    %62 = vector.load %arg19[%c0_79, %c37_80] : memref<16x342xf32, #tpu.memory_space<vmem>>, vector<16x288xf32>
    %c112_81 = arith.constant 112 : index
    %c0_82 = arith.constant 0 : index
    %63 = vector.load %arg17[%c112_81, %c0_82] : memref<144x288xf32, #tpu.memory_space<vmem>>, vector<16x288xf32>
    tpu.vector_store %arg17[%c112_81, %c0_82], %62 {strides = array<i32>} : memref<144x288xf32, #tpu.memory_space<vmem>>, vector<16x288xf32>,
    %c0_83 = arith.constant 0 : index
    %c38_84 = arith.constant 38 : index
    %64 = vector.load %arg19[%c0_83, %c38_84] : memref<16x342xf32, #tpu.memory_space<vmem>>, vector<16x288xf32>
    %c128_85 = arith.constant 128 : index
    %c0_86 = arith.constant 0 : index
    %65 = vector.load %arg17[%c128_85, %c0_86] : memref<144x288xf32, #tpu.memory_space<vmem>>, vector<16x288xf32>
    tpu.vector_store %arg17[%c128_85, %c0_86], %64 {strides = array<i32>} : memref<144x288xf32, #tpu.memory_space<vmem>>, vector<16x288xf32>,
    %c0_87 = arith.constant 0 : index
    %c0_88 = arith.constant 0 : index
    %66 = vector.load %arg5[%c0_87, %c0_88] : memref<6x144xf32, #tpu.memory_space<vmem>>, vector<6x144xf32>
    %c0_89 = arith.constant 0 : index
    %c0_90 = arith.constant 0 : index
    %67 = vector.load %arg17[%c0_89, %c0_90] : memref<144x288xf32, #tpu.memory_space<vmem>>, vector<144x288xf32>
    %cst_91 = arith.constant dense<0.000000e+00> : vector<6x288xf32>
    %68 = tpu.matmul %66, %67, %cst_91 {dimension_numbers = #tpu.dot_dimension_numbers<[1], [0], [0], [1], [0, 0, 1, 1], [], []>} : vector<6x144xf32>, vector<144x288xf32>, vector<6x288xf32> -> vector<6x288xf32>
    %c0_92 = arith.constant 0 : index
    %c0_93 = arith.constant 0 : index
    %69 = vector.load %arg6[%c0_92, %c0_93] : memref<6x1xf32, #tpu.memory_space<vmem>>, vector<6x1xf32>
    %70 = vector.broadcast %69 : vector<6x1xf32> to vector<6x288xf32>
    %71 = arith.addf %68, %70 : vector<6x288xf32>
    %72 = vector.broadcast %0 : vector<1x288xf32> to vector<6x288xf32>
    %73 = arith.mulf %71, %72 : vector<6x288xf32>
    %c0_94 = arith.constant 0 : index
    %c0_95 = arith.constant 0 : index
    %c0_96 = arith.constant 0 : index
    %74 = vector.load %arg13[%c0_94, %c0_95, %c0_96] : memref<1x6x288xf32, #tpu.memory_space<vmem>>, vector<1x6x288xf32>
    %75 = vector.shape_cast %74 : vector<1x6x288xf32> to vector<6x288xf32>
    %76 = vector.shape_cast %73 : vector<6x288xf32> to vector<1x6x288xf32>
    tpu.vector_store %arg13[%c0_94, %c0_95, %c0_96], %76 {strides = array<i32>} : memref<1x6x288xf32, #tpu.memory_space<vmem>>, vector<1x6x288xf32>,
    %c0_97 = arith.constant 0 : index
    %c19_98 = arith.constant 19 : index
    %77 = vector.load %arg20[%c0_97, %c19_98] : memref<8x342xf32, #tpu.memory_space<vmem>>, vector<6x288xf32>
    tpu.vector_store %arg20[%c0_97, %c19_98], %73 {strides = array<i32>} : memref<8x342xf32, #tpu.memory_space<vmem>>, vector<6x288xf32>,
    %c0_99 = arith.constant 0 : index
    %c0_100 = arith.constant 0 : index
    %78 = vector.load %arg20[%c0_99, %c0_100] : memref<8x342xf32, #tpu.memory_space<vmem>>, vector<8x288xf32>
    %c0_101 = arith.constant 0 : index
    %c0_102 = arith.constant 0 : index
    %79 = vector.load %arg18[%c0_101, %c0_102] : memref<72x288xf32, #tpu.memory_space<vmem>>, vector<8x288xf32>
    tpu.vector_store %arg18[%c0_101, %c0_102], %78 {strides = array<i32>} : memref<72x288xf32, #tpu.memory_space<vmem>>, vector<8x288xf32>,
    %c0_103 = arith.constant 0 : index
    %c1_104 = arith.constant 1 : index
    %80 = vector.load %arg20[%c0_103, %c1_104] : memref<8x342xf32, #tpu.memory_space<vmem>>, vector<8x288xf32>
    %c8 = arith.constant 8 : index
    %c0_105 = arith.constant 0 : index
    %81 = vector.load %arg18[%c8, %c0_105] : memref<72x288xf32, #tpu.memory_space<vmem>>, vector<8x288xf32>
    tpu.vector_store %arg18[%c8, %c0_105], %80 {strides = array<i32>} : memref<72x288xf32, #tpu.memory_space<vmem>>, vector<8x288xf32>,
    %c0_106 = arith.constant 0 : index
    %c2_107 = arith.constant 2 : index
    %82 = vector.load %arg20[%c0_106, %c2_107] : memref<8x342xf32, #tpu.memory_space<vmem>>, vector<8x288xf32>
    %c16_108 = arith.constant 16 : index
    %c0_109 = arith.constant 0 : index
    %83 = vector.load %arg18[%c16_108, %c0_109] : memref<72x288xf32, #tpu.memory_space<vmem>>, vector<8x288xf32>
    tpu.vector_store %arg18[%c16_108, %c0_109], %82 {strides = array<i32>} : memref<72x288xf32, #tpu.memory_space<vmem>>, vector<8x288xf32>,
    %c0_110 = arith.constant 0 : index
    %c18_111 = arith.constant 18 : index
    %84 = vector.load %arg20[%c0_110, %c18_111] : memref<8x342xf32, #tpu.memory_space<vmem>>, vector<8x288xf32>
    %c24 = arith.constant 24 : index
    %c0_112 = arith.constant 0 : index
    %85 = vector.load %arg18[%c24, %c0_112] : memref<72x288xf32, #tpu.memory_space<vmem>>, vector<8x288xf32>
    tpu.vector_store %arg18[%c24, %c0_112], %84 {strides = array<i32>} : memref<72x288xf32, #tpu.memory_space<vmem>>, vector<8x288xf32>,
    %c0_113 = arith.constant 0 : index
    %c19_114 = arith.constant 19 : index
    %86 = vector.load %arg20[%c0_113, %c19_114] : memref<8x342xf32, #tpu.memory_space<vmem>>, vector<8x288xf32>
    %c32_115 = arith.constant 32 : index
    %c0_116 = arith.constant 0 : index
    %87 = vector.load %arg18[%c32_115, %c0_116] : memref<72x288xf32, #tpu.memory_space<vmem>>, vector<8x288xf32>
    tpu.vector_store %arg18[%c32_115, %c0_116], %86 {strides = array<i32>} : memref<72x288xf32, #tpu.memory_space<vmem>>, vector<8x288xf32>,
    %c0_117 = arith.constant 0 : index
    %c20_118 = arith.constant 20 : index
    %88 = vector.load %arg20[%c0_117, %c20_118] : memref<8x342xf32, #tpu.memory_space<vmem>>, vector<8x288xf32>
    %c40 = arith.constant 40 : index
    %c0_119 = arith.constant 0 : index
    %89 = vector.load %arg18[%c40, %c0_119] : memref<72x288xf32, #tpu.memory_space<vmem>>, vector<8x288xf32>
    tpu.vector_store %arg18[%c40, %c0_119], %88 {strides = array<i32>} : memref<72x288xf32, #tpu.memory_space<vmem>>, vector<8x288xf32>,
    %c0_120 = arith.constant 0 : index
    %c36_121 = arith.constant 36 : index
    %90 = vector.load %arg20[%c0_120, %c36_121] : memref<8x342xf32, #tpu.memory_space<vmem>>, vector<8x288xf32>
    %c48_122 = arith.constant 48 : index
    %c0_123 = arith.constant 0 : index
    %91 = vector.load %arg18[%c48_122, %c0_123] : memref<72x288xf32, #tpu.memory_space<vmem>>, vector<8x288xf32>
    tpu.vector_store %arg18[%c48_122, %c0_123], %90 {strides = array<i32>} : memref<72x288xf32, #tpu.memory_space<vmem>>, vector<8x288xf32>,
    %c0_124 = arith.constant 0 : index
    %c37_125 = arith.constant 37 : index
    %92 = vector.load %arg20[%c0_124, %c37_125] : memref<8x342xf32, #tpu.memory_space<vmem>>, vector<8x288xf32>
    %c56 = arith.constant 56 : index
    %c0_126 = arith.constant 0 : index
    %93 = vector.load %arg18[%c56, %c0_126] : memref<72x288xf32, #tpu.memory_space<vmem>>, vector<8x288xf32>
    tpu.vector_store %arg18[%c56, %c0_126], %92 {strides = array<i32>} : memref<72x288xf32, #tpu.memory_space<vmem>>, vector<8x288xf32>,
    %c0_127 = arith.constant 0 : index
    %c38_128 = arith.constant 38 : index
    %94 = vector.load %arg20[%c0_127, %c38_128] : memref<8x342xf32, #tpu.memory_space<vmem>>, vector<8x288xf32>
    %c64_129 = arith.constant 64 : index
    %c0_130 = arith.constant 0 : index
    %95 = vector.load %arg18[%c64_129, %c0_130] : memref<72x288xf32, #tpu.memory_space<vmem>>, vector<8x288xf32>
    tpu.vector_store %arg18[%c64_129, %c0_130], %94 {strides = array<i32>} : memref<72x288xf32, #tpu.memory_space<vmem>>, vector<8x288xf32>,
    %c0_131 = arith.constant 0 : index
    %c0_132 = arith.constant 0 : index
    %96 = vector.load %arg7[%c0_131, %c0_132] : memref<16x144xf32, #tpu.memory_space<vmem>>, vector<16x144xf32>
    %c0_133 = arith.constant 0 : index
    %c0_134 = arith.constant 0 : index
    %97 = vector.load %arg16[%c0_133, %c0_134] : memref<144x288xf32, #tpu.memory_space<vmem>>, vector<144x288xf32>
    %cst_135 = arith.constant dense<0.000000e+00> : vector<16x288xf32>
    %98 = tpu.matmul %96, %97, %cst_135 {dimension_numbers = #tpu.dot_dimension_numbers<[1], [0], [0], [1], [0, 0, 1, 1], [], []>} : vector<16x144xf32>, vector<144x288xf32>, vector<16x288xf32> -> vector<16x288xf32>
    %c0_136 = arith.constant 0 : index
    %c0_137 = arith.constant 0 : index
    %99 = vector.load %arg8[%c0_136, %c0_137] : memref<16x72xf32, #tpu.memory_space<vmem>>, vector<16x72xf32>
    %c0_138 = arith.constant 0 : index
    %c0_139 = arith.constant 0 : index
    %100 = vector.load %arg18[%c0_138, %c0_139] : memref<72x288xf32, #tpu.memory_space<vmem>>, vector<72x288xf32>
    %cst_140 = arith.constant dense<0.000000e+00> : vector<16x288xf32>
    %101 = tpu.matmul %99, %100, %cst_140 {dimension_numbers = #tpu.dot_dimension_numbers<[1], [0], [0], [1], [0, 0, 1, 1], [], []>} : vector<16x72xf32>, vector<72x288xf32>, vector<16x288xf32> -> vector<16x288xf32>
    %102 = arith.addf %98, %101 : vector<16x288xf32>
    %c0_141 = arith.constant 0 : index
    %c0_142 = arith.constant 0 : index
    %103 = vector.load %arg9[%c0_141, %c0_142] : memref<16x1xf32, #tpu.memory_space<vmem>>, vector<16x1xf32>
    %104 = vector.broadcast %103 : vector<16x1xf32> to vector<16x288xf32>
    %105 = arith.addf %102, %104 : vector<16x288xf32>
    %cst_143 = arith.constant 0.000000e+00 : f32
    %106 = vector.broadcast %cst_143 : f32 to vector<16x288xf32>
    %107 = arith.maximumf %105, %106 : vector<16x288xf32>
    %108 = vector.broadcast %0 : vector<1x288xf32> to vector<16x288xf32>
    %109 = arith.mulf %107, %108 : vector<16x288xf32>
    %c0_144 = arith.constant 0 : index
    %c0_145 = arith.constant 0 : index
    %c0_146 = arith.constant 0 : index
    %110 = vector.load %arg14[%c0_144, %c0_145, %c0_146] : memref<1x16x288xf32, #tpu.memory_space<vmem>>, vector<1x16x288xf32>
    %111 = vector.shape_cast %110 : vector<1x16x288xf32> to vector<16x288xf32>
    %112 = vector.shape_cast %109 : vector<16x288xf32> to vector<1x16x288xf32>
    tpu.vector_store %arg14[%c0_144, %c0_145, %c0_146], %112 {strides = array<i32>} : memref<1x16x288xf32, #tpu.memory_space<vmem>>, vector<1x16x288xf32>,
    %c0_147 = arith.constant 0 : index
    %c19_148 = arith.constant 19 : index
    %113 = vector.load %arg21[%c0_147, %c19_148] : memref<16x342xf32, #tpu.memory_space<vmem>>, vector<16x288xf32>
    tpu.vector_store %arg21[%c0_147, %c19_148], %109 {strides = array<i32>} : memref<16x342xf32, #tpu.memory_space<vmem>>, vector<16x288xf32>,
    %c0_149 = arith.constant 0 : index
    %c0_150 = arith.constant 0 : index
    %114 = vector.load %arg21[%c0_149, %c0_150] : memref<16x342xf32, #tpu.memory_space<vmem>>, vector<16x288xf32>
    %c0_151 = arith.constant 0 : index
    %c0_152 = arith.constant 0 : index
    %115 = vector.load %arg17[%c0_151, %c0_152] : memref<144x288xf32, #tpu.memory_space<vmem>>, vector<16x288xf32>
    tpu.vector_store %arg17[%c0_151, %c0_152], %114 {strides = array<i32>} : memref<144x288xf32, #tpu.memory_space<vmem>>, vector<16x288xf32>,
    %c0_153 = arith.constant 0 : index
    %c1_154 = arith.constant 1 : index
    %116 = vector.load %arg21[%c0_153, %c1_154] : memref<16x342xf32, #tpu.memory_space<vmem>>, vector<16x288xf32>
    %c16_155 = arith.constant 16 : index
    %c0_156 = arith.constant 0 : index
    %117 = vector.load %arg17[%c16_155, %c0_156] : memref<144x288xf32, #tpu.memory_space<vmem>>, vector<16x288xf32>
    tpu.vector_store %arg17[%c16_155, %c0_156], %116 {strides = array<i32>} : memref<144x288xf32, #tpu.memory_space<vmem>>, vector<16x288xf32>,
    %c0_157 = arith.constant 0 : index
    %c2_158 = arith.constant 2 : index
    %118 = vector.load %arg21[%c0_157, %c2_158] : memref<16x342xf32, #tpu.memory_space<vmem>>, vector<16x288xf32>
    %c32_159 = arith.constant 32 : index
    %c0_160 = arith.constant 0 : index
    %119 = vector.load %arg17[%c32_159, %c0_160] : memref<144x288xf32, #tpu.memory_space<vmem>>, vector<16x288xf32>
    tpu.vector_store %arg17[%c32_159, %c0_160], %118 {strides = array<i32>} : memref<144x288xf32, #tpu.memory_space<vmem>>, vector<16x288xf32>,
    %c0_161 = arith.constant 0 : index
    %c18_162 = arith.constant 18 : index
    %120 = vector.load %arg21[%c0_161, %c18_162] : memref<16x342xf32, #tpu.memory_space<vmem>>, vector<16x288xf32>
    %c48_163 = arith.constant 48 : index
    %c0_164 = arith.constant 0 : index
    %121 = vector.load %arg17[%c48_163, %c0_164] : memref<144x288xf32, #tpu.memory_space<vmem>>, vector<16x288xf32>
    tpu.vector_store %arg17[%c48_163, %c0_164], %120 {strides = array<i32>} : memref<144x288xf32, #tpu.memory_space<vmem>>, vector<16x288xf32>,
    %c0_165 = arith.constant 0 : index
    %c19_166 = arith.constant 19 : index
    %122 = vector.load %arg21[%c0_165, %c19_166] : memref<16x342xf32, #tpu.memory_space<vmem>>, vector<16x288xf32>
    %c64_167 = arith.constant 64 : index
    %c0_168 = arith.constant 0 : index
    %123 = vector.load %arg17[%c64_167, %c0_168] : memref<144x288xf32, #tpu.memory_space<vmem>>, vector<16x288xf32>
    tpu.vector_store %arg17[%c64_167, %c0_168], %122 {strides = array<i32>} : memref<144x288xf32, #tpu.memory_space<vmem>>, vector<16x288xf32>,
    %c0_169 = arith.constant 0 : index
    %c20_170 = arith.constant 20 : index
    %124 = vector.load %arg21[%c0_169, %c20_170] : memref<16x342xf32, #tpu.memory_space<vmem>>, vector<16x288xf32>
    %c80_171 = arith.constant 80 : index
    %c0_172 = arith.constant 0 : index
    %125 = vector.load %arg17[%c80_171, %c0_172] : memref<144x288xf32, #tpu.memory_space<vmem>>, vector<16x288xf32>
    tpu.vector_store %arg17[%c80_171, %c0_172], %124 {strides = array<i32>} : memref<144x288xf32, #tpu.memory_space<vmem>>, vector<16x288xf32>,
    %c0_173 = arith.constant 0 : index
    %c36_174 = arith.constant 36 : index
    %126 = vector.load %arg21[%c0_173, %c36_174] : memref<16x342xf32, #tpu.memory_space<vmem>>, vector<16x288xf32>
    %c96_175 = arith.constant 96 : index
    %c0_176 = arith.constant 0 : index
    %127 = vector.load %arg17[%c96_175, %c0_176] : memref<144x288xf32, #tpu.memory_space<vmem>>, vector<16x288xf32>
    tpu.vector_store %arg17[%c96_175, %c0_176], %126 {strides = array<i32>} : memref<144x288xf32, #tpu.memory_space<vmem>>, vector<16x288xf32>,
    %c0_177 = arith.constant 0 : index
    %c37_178 = arith.constant 37 : index
    %128 = vector.load %arg21[%c0_177, %c37_178] : memref<16x342xf32, #tpu.memory_space<vmem>>, vector<16x288xf32>
    %c112_179 = arith.constant 112 : index
    %c0_180 = arith.constant 0 : index
    %129 = vector.load %arg17[%c112_179, %c0_180] : memref<144x288xf32, #tpu.memory_space<vmem>>, vector<16x288xf32>
    tpu.vector_store %arg17[%c112_179, %c0_180], %128 {strides = array<i32>} : memref<144x288xf32, #tpu.memory_space<vmem>>, vector<16x288xf32>,
    %c0_181 = arith.constant 0 : index
    %c38_182 = arith.constant 38 : index
    %130 = vector.load %arg21[%c0_181, %c38_182] : memref<16x342xf32, #tpu.memory_space<vmem>>, vector<16x288xf32>
    %c128_183 = arith.constant 128 : index
    %c0_184 = arith.constant 0 : index
    %131 = vector.load %arg17[%c128_183, %c0_184] : memref<144x288xf32, #tpu.memory_space<vmem>>, vector<16x288xf32>
    tpu.vector_store %arg17[%c128_183, %c0_184], %130 {strides = array<i32>} : memref<144x288xf32, #tpu.memory_space<vmem>>, vector<16x288xf32>,
    %c0_185 = arith.constant 0 : index
    %c0_186 = arith.constant 0 : index
    %132 = vector.load %arg10[%c0_185, %c0_186] : memref<6x144xf32, #tpu.memory_space<vmem>>, vector<6x144xf32>
    %c0_187 = arith.constant 0 : index
    %c0_188 = arith.constant 0 : index
    %133 = vector.load %arg17[%c0_187, %c0_188] : memref<144x288xf32, #tpu.memory_space<vmem>>, vector<144x288xf32>
    %cst_189 = arith.constant dense<0.000000e+00> : vector<6x288xf32>
    %134 = tpu.matmul %132, %133, %cst_189 {dimension_numbers = #tpu.dot_dimension_numbers<[1], [0], [0], [1], [0, 0, 1, 1], [], []>} : vector<6x144xf32>, vector<144x288xf32>, vector<6x288xf32> -> vector<6x288xf32>
    %c0_190 = arith.constant 0 : index
    %c0_191 = arith.constant 0 : index
    %135 = vector.load %arg11[%c0_190, %c0_191] : memref<6x1xf32, #tpu.memory_space<vmem>>, vector<6x1xf32>
    %136 = vector.broadcast %135 : vector<6x1xf32> to vector<6x288xf32>
    %137 = arith.addf %134, %136 : vector<6x288xf32>
    %138 = vector.broadcast %0 : vector<1x288xf32> to vector<6x288xf32>
    %139 = arith.mulf %137, %138 : vector<6x288xf32>
    %c0_192 = arith.constant 0 : index
    %c0_193 = arith.constant 0 : index
    %c0_194 = arith.constant 0 : index
    %140 = vector.load %arg12[%c0_192, %c0_193, %c0_194] : memref<1x6x288xf32, #tpu.memory_space<vmem>>, vector<1x6x288xf32>
    %141 = vector.shape_cast %140 : vector<1x6x288xf32> to vector<6x288xf32>
    %142 = vector.shape_cast %139 : vector<6x288xf32> to vector<1x6x288xf32>
    tpu.vector_store %arg12[%c0_192, %c0_193, %c0_194], %142 {strides = array<i32>} : memref<1x6x288xf32, #tpu.memory_space<vmem>>, vector<1x6x288xf32>,
    return
  }
  func.func @transform_0(%arg0: i32) -> (i32, i32, i32) {
    %c0_i32 = arith.constant 0 : i32
    %c0_i32_0 = arith.constant 0 : i32
    %c0_i32_1 = arith.constant 0 : i32
    return %arg0, %c0_i32, %c0_i32_0 : i32, i32, i32
  }
  func.func @transform_1(%arg0: i32) -> (i32, i32) {
    %c0_i32 = arith.constant 0 : i32
    %c0_i32_0 = arith.constant 0 : i32
    %c0_i32_1 = arith.constant 0 : i32
    return %c0_i32, %c0_i32_0 : i32, i32
  }
  func.func @transform_2(%arg0: i32) -> (i32, i32) {
    %c0_i32 = arith.constant 0 : i32
    %c0_i32_0 = arith.constant 0 : i32
    %c0_i32_1 = arith.constant 0 : i32
    return %c0_i32, %c0_i32_0 : i32, i32
  }
  func.func @transform_3(%arg0: i32) -> (i32, i32) {
    %c0_i32 = arith.constant 0 : i32
    %c0_i32_0 = arith.constant 0 : i32
    %c0_i32_1 = arith.constant 0 : i32
    return %c0_i32, %c0_i32_0 : i32, i32
  }
  func.func @transform_4(%arg0: i32) -> (i32, i32) {
    %c0_i32 = arith.constant 0 : i32
    %c0_i32_0 = arith.constant 0 : i32
    %c0_i32_1 = arith.constant 0 : i32
    return %c0_i32, %c0_i32_0 : i32, i32
  }
  func.func @transform_5(%arg0: i32) -> (i32, i32) {
    %c0_i32 = arith.constant 0 : i32
    %c0_i32_0 = arith.constant 0 : i32
    %c0_i32_1 = arith.constant 0 : i32
    return %c0_i32, %c0_i32_0 : i32, i32
  }
  func.func @transform_6(%arg0: i32) -> (i32, i32) {
    %c0_i32 = arith.constant 0 : i32
    %c0_i32_0 = arith.constant 0 : i32
    %c0_i32_1 = arith.constant 0 : i32
    return %c0_i32, %c0_i32_0 : i32, i32
  }
  func.func @transform_7(%arg0: i32) -> (i32, i32) {
    %c0_i32 = arith.constant 0 : i32
    %c0_i32_0 = arith.constant 0 : i32
    %c0_i32_1 = arith.constant 0 : i32
    return %c0_i32, %c0_i32_0 : i32, i32
  }
  func.func @transform_8(%arg0: i32) -> (i32, i32) {
    %c0_i32 = arith.constant 0 : i32
    %c0_i32_0 = arith.constant 0 : i32
    %c0_i32_1 = arith.constant 0 : i32
    return %c0_i32, %c0_i32_0 : i32, i32
  }
  func.func @transform_9(%arg0: i32) -> (i32, i32) {
    %c0_i32 = arith.constant 0 : i32
    %c0_i32_0 = arith.constant 0 : i32
    %c0_i32_1 = arith.constant 0 : i32
    return %c0_i32, %c0_i32_0 : i32, i32
  }
  func.func @transform_10(%arg0: i32) -> (i32, i32) {
    %c0_i32 = arith.constant 0 : i32
    %c0_i32_0 = arith.constant 0 : i32
    %c0_i32_1 = arith.constant 0 : i32
    return %c0_i32, %c0_i32_0 : i32, i32
  }
  func.func @transform_11(%arg0: i32) -> (i32, i32, i32) {
    %c0_i32 = arith.constant 0 : i32
    %c0_i32_0 = arith.constant 0 : i32
    %c0_i32_1 = arith.constant 0 : i32
    return %arg0, %c0_i32, %c0_i32_0 : i32, i32, i32
  }
  func.func @transform_12(%arg0: i32) -> (i32, i32, i32) {
    %c0_i32 = arith.constant 0 : i32
    %c0_i32_0 = arith.constant 0 : i32
    %c0_i32_1 = arith.constant 0 : i32
    return %arg0, %c0_i32, %c0_i32_0 : i32, i32, i32
  }
  func.func @transform_13(%arg0: i32) -> (i32, i32, i32) {
    %c0_i32 = arith.constant 0 : i32
    %c0_i32_0 = arith.constant 0 : i32
    %c0_i32_1 = arith.constant 0 : i32
    return %arg0, %c0_i32, %c0_i32_0 : i32, i32, i32
  }
  func.func @transform_14(%arg0: i32) -> (i32, i32, i32) {
    %c0_i32 = arith.constant 0 : i32
    %c0_i32_0 = arith.constant 0 : i32
    %c0_i32_1 = arith.constant 0 : i32
    return %arg0, %c0_i32, %c0_i32_0 : i32, i32, i32
  }
}

</mosaic_0001>

<bundles_post_ra>
// kernel: base_module_forward.1
= control target key start
LH: loop header
LB: loop body
LE: loop exit
PB: predicated region body
PF: predicated region fallthrough
CT: control target
= control target key end

     0   :  { %s3532_s29 = smov 0   ;;  %s4311_s0 = inlined_call_operand.vmem [shape: f32[2,16,342], index: 0, kind: input, shape index: {}]   ;;  %s4312_s1 = inlined_call_operand.vmem [shape: f32[1,288], index: 1, kind: input, shape index: {}]   ;;  %s4313_s2 = inlined_call_operand.vmem [shape: f32[16,144], index: 2, kind: input, shape index: {}]   ;;  %s4314_s3 = inlined_call_operand.vmem [shape: f32[16,1], index: 3, kind: input, shape index: {}]   ;;  %s4315_s4 = inlined_call_operand.vmem [shape: f32[6,144], index: 4, kind: input, shape index: {}]   ;;  %s4316_s5 = inlined_call_operand.vmem [shape: f32[6,1], index: 5, kind: input, shape index: {}]   ;;  %s4317_s6 = inlined_call_operand.vmem [shape: f32[16,144], index: 6, kind: input, shape index: {}]   ;;  %s4318_s7 = inlined_call_operand.vmem [shape: f32[16,72], index: 7, kind: input, shape index: {}]   ;;  %s4319_s8 = inlined_call_operand.vmem [shape: f32[16,1], index: 8, kind: input, shape index: {}]   ;;  %s4320_s9 = inlined_call_operand.vmem [shape: f32[6,144], index: 9, kind: input, shape index: {}]   ;;  %s4321_s10 = inlined_call_operand.vmem [shape: f32[6,1], index: 10, kind: input, shape index: {}]   ;;  %s4322_s11 = inlined_call_operand.vmem [shape: f32[2,6,288], index: 11, kind: output, shape index: {0}]   ;;  %s4323_s12 = inlined_call_operand.vmem [shape: f32[2,6,288], index: 12, kind: output, shape index: {1}]   ;;  %s4324_s13 = inlined_call_operand.vmem [shape: f32[2,16,288], index: 13, kind: output, shape index: {2}]   ;;  %s4325_s14 = inlined_call_operand.vmem [shape: f32[2,16,288], index: 14, kind: output, shape index: {3}]  }
   0x1 LB: > { %s3065_s30 = sadd.s32 4294967295, %s3443_s29   ;;  %p3069_p0 = scmp.ge.s32.totalorder %s3443_s29, 1  ;;  %s3443_s29 = sphi %s3532_s29, %s25_s29  }
   0x2   : > { %p419_p1 = scmp.lt.s32.totalorder %s3443_s29, 3 }
   0x4   : > { %p420_p2 = pnand %p3069_p0, %p419_p1 }
   0x5   : > { %p480_p3 = scmp.lt.s32.totalorder (!%p420_p2), %s3065_s30, 1  ;;  %v3445_v0 = vmov (!%p420_p2), 0.0|0.0   ;;  %vm530_vm0 = vcmask (!%p420_p2), 261120   ;;  %s3446_s19 = smov (!%p420_p2), 127   ;;  %v864_v12 = vld [vmem:[%s4313_s2 + $0x8] sm:$0xff] (!%p420_p2)  ;;  %vm933_vm1 = vcmask (!%p420_p2), 130048  }
   0x6   : > { %423 = sbr.rel (%p420_p2) target bundleno = 2113 (0x841), region = 64  ;;  %3161 = vmatprep.subr.bf16.mxu1 (!%p420_p2), %v3445_v0  ;;  %s3447_s20 = smov (!%p420_p2), 126   ;;  %3077 = vmatprep.mubr.msk.f32.mxu1 (!%p420_p2), %vm933_vm1, %v864_v12  ;;  %v3454_v13 = vmov (!%p420_p2), 0   ;;  %v921_v14 = vld [vmem:[%s4314_s3] sm:$0xff] (!%p420_p2)  ;;  %v922_v15 = vld [vmem:[%s4314_s3 + $0x8] sm:$0xff] (!%p420_p2)  ;;  %vm559_vm2 = vcmask (!%p420_p2), 1039360  }
   0x7   : > { %s3448_s21 = smov (!%p420_p2), 110   ;;  %s4335_s22 = smov (!%p420_p2), 109   ;;  %3075 = vmatprep.mubr.msk.f32.mxu0 (!%p420_p2), %vm933_vm1, %v864_v12  ;;  %3435 = vset.pattern.permute.xlu0 (!%p420_p2), %v3454_v13  ;;  %vm600_vm3 = vcmask (!%p420_p2), 1031168   ;;  %vm641_vm4 = vcmask (!%p420_p2), 900096   ;;  %vm682_vm5 = vcmask (!%p420_p2), 891904   ;;  %vm723_vm6 = vcmask (!%p420_p2), 883712  }
   0x8   : > { %s4330_s23 = smov (!%p420_p2), 108   ;;  %s4333_s24 = smov (!%p420_p2), 92   ;;  %3436 = vset.pattern.permute.xlu1 (!%p420_p2), %v3454_v13  ;;  %vm764_vm7 = vcmask (!%p420_p2), 752640   ;;  %vm805_vm8 = vcmask (!%p420_p2), 744448   ;;  %vm846_vm9 = vcmask (!%p420_p2), 736256   ;;  %vm508_vm10 = vcmask (!%p420_p2), 703488  }
   0x9   : > { %s4328_s25 = smov (!%p420_p2), 91   ;;  %s4326_s26 = smov (!%p420_p2), 90   ;;  %vm1144_vm11 = vcmask (!%p420_p2), 154624   ;;  %vm1158_vm12 = vcmask (!%p420_p2), 416768   ;;  %vm1155_vm13 = vcmask (!%p420_p2), 1047704   ;;  %vm1706_vm14 = vcmask (!%p420_p2), 259072  }
   0xa   : > { %s3456_s27 = smov (!%p420_p2), 19   ;;  %vm1722_vm15 = vcmask (!%p420_p2), 1045656  }
   0xd   : > { %s4344_s30 = smov (!%p480_p3, %s3065_s30), 1 }
   0xe   : > { %s3543_s15 = smul.u32 48, %s4344_s30 }
   0xf   : > { %s4332_s17 = smul.u32 24, %s4344_s30 }
  0x10   : > { %s484_s18 = scalar_lea.vmem %s4311_s0, %s3543_s15 }
  0x11   : > { %v3550_v1 = vld [vmem:[%s484_s18 + $0x20] sm:$0xff]  ;;  %v3552_v2 = vld [vmem:[%s484_s18 + $0x8] sm:$0xff]  ;;  %v3560_v4 = vld [vmem:[%s484_s18 + $0x10] sm:$0xff] }
  0x12   : > { %v3554_v3 = vld [vmem:[%s484_s18 + $0x28] sm:$0xff]  ;;  %555 = vrot.lane.b32.xlu1 %v3550_v1, %s3446_s19  ;;  %549 = vrot.lane.b32.xlu0 %v3552_v2, %s3446_s19  ;;  %v3562_v5 = vld [vmem:[%s484_s18 + $0x18] sm:$0xff]  ;;  %529 = vst [vmem:[#allocation2 + $0x8] sm:$0xff] %v3552_v2  ;;  %533 = vst [vmem:[#allocation2 + $0x20] sm:$0xff] %v3550_v1  ;;  %v3125_v6 = vpack.c.bf16 %v3550_v1, %v3552_v2 }
  0x13   : > { %534 = vst.msk [vmem:[#allocation2 + $0x28] sm:$0xff] %vm530_vm0, %v3554_v3  ;;  %v3570_v7 = vld [vmem:[%s484_s18] sm:$0xff]  ;;  %531 = vst.msk [vmem:[#allocation2 + $0x10] sm:$0xff] %vm530_vm0, %v3560_v4  ;;  %s504_s18 = scalar_lea.vmem %s4325_s14, %s3543_s15 }
  0x14   : > { %532 = vst [vmem:[#allocation2 + $0x18] sm:$0xff] %v3562_v5  ;;  %3126 = vmatprep.subr.bf16.mxu0 %v3125_v6  ;;  %528 = vst [vmem:[#allocation2] sm:$0xff] %v3570_v7  ;;  %v3127_v8 = vpack.c.bf16 %v3562_v5, %v3570_v7 }
  0x16   : > { %557 = vrot.lane.b32.xlu1 %v3554_v3, %s3446_s19  ;;  %551 = vrot.lane.b32.xlu0 %v3560_v4, %s3446_s19 }
  0x17   : > { %3128 = vmatpush1.bf16.msra.mxu0 %v3127_v8 }
  0x1a   : > { %v872_v9 = vld [vmem:[#allocation2 + $0x28] sm:$0xff]  ;;  %553 = vrot.lane.b32.xlu1 %v3562_v5, %s3446_s19  ;;  %547 = vrot.lane.b32.xlu0 %v3570_v7, %s3446_s19  ;;  %v869_v10 = vld [vmem:[#allocation2 + $0x10] sm:$0xff] }
  0x1b   : > { %v3162_v11 = vpack.c.bf16 %v872_v9, %v869_v10 }
  0x1d   : > { %3163 = vmatpush1.bf16.msra.mxu1 %v3162_v11 }
  0x1e   : > { %592 = vrot.lane.b32.xlu1 %v3560_v4, %s3447_s20  ;;  %590 = vrot.lane.b32.xlu0 %v3552_v2, %s3447_s20 }
  0x1f   : > { %3164 = vmatprep.subr.bf16.mxu1 %v3445_v0 }
  0x22   : > { %598 = vrot.lane.b32.xlu1 %v3554_v3, %s3447_s20  ;;  %596 = vrot.lane.b32.xlu0 %v3550_v1, %s3447_s20 }
  0x26   : > { %594 = vrot.lane.b32.xlu1 %v3562_v5, %s3447_s20  ;;  %588 = vrot.lane.b32.xlu0 %v3570_v7, %s3447_s20 }
  0x2a   : > { %633 = vrot.lane.b32.xlu1 %v3560_v4, %s3448_s21  ;;  %631 = vrot.lane.b32.xlu0 %v3552_v2, %s3448_s21 }
  0x2e   : > { %639 = vrot.lane.b32.xlu1 %v3554_v3, %s3448_s21  ;;  %637 = vrot.lane.b32.xlu0 %v3550_v1, %s3448_s21 }
  0x32   : > { %635 = vrot.lane.b32.xlu1 %v3562_v5, %s3448_s21  ;;  %629 = vrot.lane.b32.xlu0 %v3570_v7, %s3448_s21 }
  0x36   : > { %674 = vrot.lane.b32.xlu1 %v3560_v4, %s4335_s22  ;;  %672 = vrot.lane.b32.xlu0 %v3552_v2, %s4335_s22 }
  0x3a   : > { %680 = vrot.lane.b32.xlu1 %v3554_v3, %s4335_s22  ;;  %678 = vrot.lane.b32.xlu0 %v3550_v1, %s4335_s22 }
  0x3e   : > { %676 = vrot.lane.b32.xlu1 %v3562_v5, %s4335_s22  ;;  %670 = vrot.lane.b32.xlu0 %v3570_v7, %s4335_s22 }
  0x42   : > { %715 = vrot.lane.b32.xlu1 %v3560_v4, %s4330_s23  ;;  %713 = vrot.lane.b32.xlu0 %v3552_v2, %s4330_s23 }
  0x46   : > { %721 = vrot.lane.b32.xlu1 %v3554_v3, %s4330_s23  ;;  %719 = vrot.lane.b32.xlu0 %v3550_v1, %s4330_s23 }
  0x4a   : > { %717 = vrot.lane.b32.xlu1 %v3562_v5, %s4330_s23  ;;  %711 = vrot.lane.b32.xlu0 %v3570_v7, %s4330_s23 }
  0x4e   : > { %756 = vrot.lane.b32.xlu1 %v3560_v4, %s4333_s24  ;;  %754 = vrot.lane.b32.xlu0 %v3552_v2, %s4333_s24 }
  0x52   : > { %762 = vrot.lane.b32.xlu1 %v3554_v3, %s4333_s24  ;;  %760 = vrot.lane.b32.xlu0 %v3550_v1, %s4333_s24 }
  0x56   : > { %758 = vrot.lane.b32.xlu1 %v3562_v5, %s4333_s24  ;;  %752 = vrot.lane.b32.xlu0 %v3570_v7, %s4333_s24 }
  0x5a   : > { %797 = vrot.lane.b32.xlu1 %v3560_v4, %s4328_s25  ;;  %795 = vrot.lane.b32.xlu0 %v3552_v2, %s4328_s25 }
  0x5e   : > { %803 = vrot.lane.b32.xlu1 %v3554_v3, %s4328_s25  ;;  %801 = vrot.lane.b32.xlu0 %v3550_v1, %s4328_s25 }
  0x62   : > { %799 = vrot.lane.b32.xlu1 %v3562_v5, %s4328_s25  ;;  %793 = vrot.lane.b32.xlu0 %v3570_v7, %s4328_s25 }
  0x66   : > { %838 = vrot.lane.b32.xlu1 %v3560_v4, %s4326_s26  ;;  %836 = vrot.lane.b32.xlu0 %v3552_v2, %s4326_s26 }
  0x6a   : > { %844 = vrot.lane.b32.xlu1 %v3554_v3, %s4326_s26  ;;  %842 = vrot.lane.b32.xlu0 %v3550_v1, %s4326_s26 }
  0x6e   : > { %840 = vrot.lane.b32.xlu1 %v3562_v5, %s4326_s26  ;;  %834 = vrot.lane.b32.xlu0 %v3570_v7, %s4326_s26  ;;  %s4337_s26 = smov 90  }
  0x72   : > { %925 = vperm.xlu0 %3435, %v921_v14   ;;  %930 = vperm.xlu1 %3436, %v922_v15  }
  0x84   : > { %v556_v16 = vpop.permute.xlu1 %555  ;;  %v550_v17 = vpop.permute.xlu0 %549 }
  0x88   : > { %v558_v18 = vpop.permute.xlu1 %557  ;;  %v552_v19 = vpop.permute.xlu0 %551 }
  0x89   : > { %v563_v20 = vsel %vm559_vm2, %v556_v16, %v558_v18  ;;  %575 = vst.msk [vmem:[#allocation2 + $0x58] sm:$0xff] %vm530_vm0, %v558_v18  ;;  %v561_v21 = vsel %vm559_vm2, %v550_v17, %v552_v19  ;;  %572 = vst.msk [vmem:[#allocation2 + $0x40] sm:$0xff] %vm530_vm0, %v552_v19 }
  0x8a   : > { %574 = vst [vmem:[#allocation2 + $0x50] sm:$0xff] %v563_v20  ;;  %571 = vst [vmem:[#allocation2 + $0x38] sm:$0xff] %v561_v21  ;;  %v3129_v22 = vpack.c.bf16 %v563_v20, %v561_v21 }
  0x8c   : > { %v554_v23 = vpop.permute.xlu1 %553  ;;  %v548_v24 = vpop.permute.xlu0 %547  ;;  %3130 = vmatprep.subr.bf16.mxu0 %v3129_v22 }
  0x8d   : > { %v562_v25 = vsel %vm559_vm2, %v554_v23, %v556_v16  ;;  %v560_v26 = vsel %vm559_vm2, %v548_v24, %v550_v17 }
  0x8e   : > { %573 = vst [vmem:[#allocation2 + $0x48] sm:$0xff] %v562_v25  ;;  %570 = vst [vmem:[#allocation2 + $0x30] sm:$0xff] %v560_v26  ;;  %v3131_v27 = vpack.c.bf16 %v562_v25, %v560_v26 }
  0x90   : > { %v593_v28 = vpop.permute.xlu1 %592  ;;  %v591_v29 = vpop.permute.xlu0 %590  ;;  %v875_v30 = vld [vmem:[#allocation2 + $0x40] sm:$0xff]  ;;  %v878_v31 = vld [vmem:[#allocation2 + $0x58] sm:$0xff]  ;;  %3132 = vmatpush1.bf16.msra.mxu0 %v3131_v27 }
  0x91   : > { %613 = vst.msk [vmem:[#allocation2 + $0x70] sm:$0xff] %vm530_vm0, %v593_v28  ;;  %v602_v32 = vsel %vm600_vm3, %v591_v29, %v593_v28  ;;  %v3165_v33 = vpack.c.bf16 %v878_v31, %v875_v30 }
  0x92   : > { %612 = vst [vmem:[#allocation2 + $0x68] sm:$0xff] %v602_v32 }
  0x93   : > { %3166 = vmatpush1.bf16.msra.mxu1 %v3165_v33 }
  0x94   : > { %v599_v34 = vpop.permute.xlu1 %598  ;;  %v597_v35 = vpop.permute.xlu0 %596  ;;  %3167 = vmatprep.subr.bf16.mxu1 %v3445_v0 }
  0x95   : > { %616 = vst.msk [vmem:[#allocation2 + $0x88] sm:$0xff] %vm530_vm0, %v599_v34  ;;  %v604_v36 = vsel %vm600_vm3, %v597_v35, %v599_v34 }
  0x96   : > { %615 = vst [vmem:[#allocation2 + $0x80] sm:$0xff] %v604_v36  ;;  %v3133_v37 = vpack.c.bf16 %v604_v36, %v602_v32 }
  0x98   : > { %v595_v38 = vpop.permute.xlu1 %594  ;;  %v589_v39 = vpop.permute.xlu0 %588  ;;  %3134 = vmatprep.subr.bf16.mxu0 %v3133_v37  ;;  %v881_v45 = vld [vmem:[#allocation2 + $0x70] sm:$0xff] }
  0x99   : > { %v603_v40 = vsel %vm600_vm3, %v595_v38, %v597_v35  ;;  %v601_v41 = vsel %vm600_vm3, %v589_v39, %v591_v29 }
  0x9a   : > { %614 = vst [vmem:[#allocation2 + $0x78] sm:$0xff] %v603_v40  ;;  %611 = vst [vmem:[#allocation2 + $0x60] sm:$0xff] %v601_v41  ;;  %v3135_v42 = vpack.c.bf16 %v603_v40, %v601_v41 }
  0x9c   : > { %v634_v43 = vpop.permute.xlu1 %633  ;;  %v632_v44 = vpop.permute.xlu0 %631  ;;  %v884_v46 = vld [vmem:[#allocation2 + $0x88] sm:$0xff]  ;;  %3136 = vmatpush1.bf16.msra.mxu0 %v3135_v42 }
  0x9d   : > { %654 = vst.msk [vmem:[#allocation2 + $0xa0] sm:$0xff] %vm530_vm0, %v634_v43  ;;  %v643_v47 = vsel %vm641_vm4, %v632_v44, %v634_v43  ;;  %v3168_v48 = vpack.c.bf16 %v884_v46, %v881_v45 }
  0x9e   : > { %653 = vst [vmem:[#allocation2 + $0x98] sm:$0xff] %v643_v47 }
  0x9f   : > { %3169 = vmatpush1.bf16.msra.mxu1 %v3168_v48 }
  0xa0   : > { %v640_v49 = vpop.permute.xlu1 %639  ;;  %v638_v50 = vpop.permute.xlu0 %637  ;;  %3170 = vmatprep.subr.bf16.mxu1 %v3445_v0 }
  0xa1   : > { %657 = vst.msk [vmem:[#allocation2 + $0xb8] sm:$0xff] %vm530_vm0, %v640_v49  ;;  %v645_v51 = vsel %vm641_vm4, %v638_v50, %v640_v49 }
  0xa2   : > { %656 = vst [vmem:[#allocation2 + $0xb0] sm:$0xff] %v645_v51  ;;  %v3137_v52 = vpack.c.bf16 %v645_v51, %v643_v47 }
  0xa4   : > { %v636_v53 = vpop.permute.xlu1 %635  ;;  %v630_v54 = vpop.permute.xlu0 %629  ;;  %3138 = vmatprep.subr.bf16.mxu0 %v3137_v52  ;;  %v887_v60 = vld [vmem:[#allocation2 + $0xa0] sm:$0xff] }
  0xa5   : > { %v644_v55 = vsel %vm641_vm4, %v636_v53, %v638_v50  ;;  %v642_v56 = vsel %vm641_vm4, %v630_v54, %v632_v44 }
  0xa6   : > { %655 = vst [vmem:[#allocation2 + $0xa8] sm:$0xff] %v644_v55  ;;  %652 = vst [vmem:[#allocation2 + $0x90] sm:$0xff] %v642_v56  ;;  %v3139_v57 = vpack.c.bf16 %v644_v55, %v642_v56 }
  0xa8   : > { %v675_v58 = vpop.permute.xlu1 %674  ;;  %v673_v59 = vpop.permute.xlu0 %672  ;;  %v890_v61 = vld [vmem:[#allocation2 + $0xb8] sm:$0xff]  ;;  %3140 = vmatpush1.bf16.msra.mxu0 %v3139_v57 }
  0xa9   : > { %695 = vst.msk [vmem:[#allocation2 + $0xd0] sm:$0xff] %vm530_vm0, %v675_v58  ;;  %v684_v62 = vsel %vm682_vm5, %v673_v59, %v675_v58  ;;  %v3171_v63 = vpack.c.bf16 %v890_v61, %v887_v60 }
  0xaa   : > { %694 = vst [vmem:[#allocation2 + $0xc8] sm:$0xff] %v684_v62 }
  0xab   : > { %3172 = vmatpush1.bf16.msra.mxu1 %v3171_v63 }
  0xac   : > { %v681_v1 = vpop.permute.xlu1 %680  ;;  %v679_v2 = vpop.permute.xlu0 %678  ;;  %3173 = vmatprep.subr.bf16.mxu1 %v3445_v0 }
  0xad   : > { %698 = vst.msk [vmem:[#allocation2 + $0xe8] sm:$0xff] %vm530_vm0, %v681_v1  ;;  %v686_v3 = vsel %vm682_vm5, %v679_v2, %v681_v1 }
  0xae   : > { %697 = vst [vmem:[#allocation2 + $0xe0] sm:$0xff] %v686_v3  ;;  %v3141_v4 = vpack.c.bf16 %v686_v3, %v684_v62 }
  0xb0   : > { %v677_v5 = vpop.permute.xlu1 %676  ;;  %v671_v6 = vpop.permute.xlu0 %670  ;;  %3142 = vmatprep.subr.bf16.mxu0 %v3141_v4  ;;  %v893_v12 = vld [vmem:[#allocation2 + $0xd0] sm:$0xff] }
  0xb1   : > { %v685_v7 = vsel %vm682_vm5, %v677_v5, %v679_v2  ;;  %v683_v8 = vsel %vm682_vm5, %v671_v6, %v673_v59 }
  0xb2   : > { %696 = vst [vmem:[#allocation2 + $0xd8] sm:$0xff] %v685_v7  ;;  %693 = vst [vmem:[#allocation2 + $0xc0] sm:$0xff] %v683_v8  ;;  %v3143_v9 = vpack.c.bf16 %v685_v7, %v683_v8 }
  0xb4   : > { %v716_v10 = vpop.permute.xlu1 %715  ;;  %v714_v11 = vpop.permute.xlu0 %713  ;;  %v896_v13 = vld [vmem:[#allocation2 + $0xe8] sm:$0xff]  ;;  %3144 = vmatpush1.bf16.msra.mxu0 %v3143_v9  ;;  %v863_v9 = vld [vmem:[%s4313_s2] sm:$0xff] }
  0xb5   : > { %736 = vst.msk [vmem:[#allocation2 + $0x100] sm:$0xff] %vm530_vm0, %v716_v10  ;;  %v725_v14 = vsel %vm723_vm6, %v714_v11, %v716_v10  ;;  %v3174_v15 = vpack.c.bf16 %v896_v13, %v893_v12  ;;  %v865_v12 = vld [vmem:[%s4313_s2 + $0x10] sm:$0xff]  ;;  %v1099_v13 = vlaneseq }
  0xb6   : > { %735 = vst [vmem:[#allocation2 + $0xf8] sm:$0xff] %v725_v14 }
  0xb7   : > { %3175 = vmatpush1.bf16.msra.mxu1 %v3174_v15 }
  0xb8   : > { %v722_v16 = vpop.permute.xlu1 %721  ;;  %v720_v17 = vpop.permute.xlu0 %719  ;;  %3176 = vmatprep.subr.bf16.mxu1 %v3445_v0 }
  0xb9   : > { %739 = vst.msk [vmem:[#allocation2 + $0x118] sm:$0xff] %vm530_vm0, %v722_v16  ;;  %v727_v18 = vsel %vm723_vm6, %v720_v17, %v722_v16  ;;  %v3455_v16 = vmov 0.0  }
  0xba   : > { %738 = vst [vmem:[#allocation2 + $0x110] sm:$0xff] %v727_v18  ;;  %v3145_v19 = vpack.c.bf16 %v727_v18, %v725_v14  ;;  %v1100_v14 = vshrl.u32 %v1099_v13, 7  ;;  %506 = vst [vmem:[#allocation5] sm:$0xff] %v3455_v16  ;;  %v505_v18 = vld [vmem:[%s4312_s1] sm:$0x7] }
  0xbb   : > { %510 = vst [vmem:[#allocation5 + $0x18] sm:$0xff] %v3455_v16  ;;  %513 = vst [vmem:[#allocation6] sm:$0xff] %v3455_v16 }
  0xbc   : > { %v718_v20 = vpop.permute.xlu1 %717  ;;  %v712_v21 = vpop.permute.xlu0 %711  ;;  %3146 = vmatprep.subr.bf16.mxu0 %v3145_v19  ;;  %v899_v27 = vld [vmem:[#allocation2 + $0x100] sm:$0xff]  ;;  %v1101_v15 = vsub.s32 0, %v1100_v14  ;;  %514 = vst [vmem:[#allocation6 + $0x8] sm:$0xff] %v3455_v16  ;;  %516 = vst [vmem:[#allocation7] sm:$0xff] %v3455_v16  ;;  %v1105_v19 = vsub.s32 1, %v1100_v14 }
  0xbd   : > { %v726_v22 = vsel %vm723_vm6, %v718_v20, %v720_v17  ;;  %v724_v23 = vsel %vm723_vm6, %v712_v21, %v714_v11  ;;  %v866_v11 = vld [vmem:[%s4313_s2 + $0x18] sm:$0xff]  ;;  %519 = vst [vmem:[#allocation7 + $0x18] sm:$0xff] %v3455_v16  ;;  %509 = vst.msk [vmem:[#allocation5 + $0x10] sm:$0xff] %vm508_vm10, %v3455_v16  ;;  %v1109_v20 = vsub.s32 2, %v1100_v14 }
  0xbe   : > { %737 = vst [vmem:[#allocation2 + $0x108] sm:$0xff] %v726_v22  ;;  %734 = vst [vmem:[#allocation2 + $0xf0] sm:$0xff] %v724_v23  ;;  %v3147_v24 = vpack.c.bf16 %v726_v22, %v724_v23  ;;  %v3763_v23 = vrot.slane %v505_v18, %v1101_v15 }
  0xbf   : > { %515 = vst.msk [vmem:[#allocation6 + $0x10] sm:$0xff] %vm508_vm10, %v3455_v16  ;;  %512 = vst.msk [vmem:[#allocation5 + $0x28] sm:$0xff] %vm508_vm10, %v3455_v16 }
  0xc0   : > { %v757_v25 = vpop.permute.xlu1 %756  ;;  %v755_v26 = vpop.permute.xlu0 %754  ;;  %v902_v28 = vld [vmem:[#allocation2 + $0x118] sm:$0xff]  ;;  %3148 = vmatpush1.bf16.msra.mxu0 %v3147_v24  ;;  %518 = vst.msk [vmem:[#allocation7 + $0x10] sm:$0xff] %vm508_vm10, %v3455_v16  ;;  %521 = vst.msk [vmem:[#allocation7 + $0x28] sm:$0xff] %vm508_vm10, %v3455_v16  ;;  %vm1725_vm10 = vcmask 414720  }
  0xc1   : > { %777 = vst.msk [vmem:[#allocation2 + $0x130] sm:$0xff] %vm530_vm0, %v757_v25  ;;  %v766_v29 = vsel %vm764_vm7, %v755_v26, %v757_v25  ;;  %v3177_v30 = vpack.c.bf16 %v902_v28, %v899_v27 }
  0xc2   : > { %776 = vst [vmem:[#allocation2 + $0x128] sm:$0xff] %v766_v29 }
  0xc3   : > { %3178 = vmatpush1.bf16.msra.mxu1 %v3177_v30 }
  0xc4   : > { %v763_v31 = vpop.permute.xlu1 %762  ;;  %v761_v32 = vpop.permute.xlu0 %760  ;;  %3179 = vmatprep.subr.bf16.mxu1 %v3445_v0 }
  0xc5   : > { %780 = vst.msk [vmem:[#allocation2 + $0x148] sm:$0xff] %vm530_vm0, %v763_v31  ;;  %v768_v33 = vsel %vm764_vm7, %v761_v32, %v763_v31  ;;  %v3771_v31 = vrot.slane %v505_v18, %v1109_v20 }
  0xc6   : > { %779 = vst [vmem:[#allocation2 + $0x140] sm:$0xff] %v768_v33  ;;  %v3149_v34 = vpack.c.bf16 %v768_v33, %v766_v29 }
  0xc8   : > { %v759_v35 = vpop.permute.xlu1 %758  ;;  %v753_v36 = vpop.permute.xlu0 %752  ;;  %3150 = vmatprep.subr.bf16.mxu0 %v3149_v34  ;;  %v905_v42 = vld [vmem:[#allocation2 + $0x130] sm:$0xff] }
  0xc9   : > { %v767_v37 = vsel %vm764_vm7, %v759_v35, %v761_v32  ;;  %v765_v38 = vsel %vm764_vm7, %v753_v36, %v755_v26  ;;  %v3765_v26 = vrot.slane %v505_v18, %v1105_v19 }
  0xca   : > { %778 = vst [vmem:[#allocation2 + $0x138] sm:$0xff] %v767_v37  ;;  %775 = vst [vmem:[#allocation2 + $0x120] sm:$0xff] %v765_v38  ;;  %v3151_v39 = vpack.c.bf16 %v767_v37, %v765_v38 }
  0xcc   : > { %v798_v40 = vpop.permute.xlu1 %797  ;;  %v796_v41 = vpop.permute.xlu0 %795  ;;  %v908_v43 = vld [vmem:[#allocation2 + $0x148] sm:$0xff]  ;;  %3152 = vmatpush1.bf16.msra.mxu0 %v3151_v39 }
  0xcd   : > { %818 = vst.msk [vmem:[#allocation2 + $0x160] sm:$0xff] %vm530_vm0, %v798_v40  ;;  %v807_v44 = vsel %vm805_vm8, %v796_v41, %v798_v40  ;;  %v3180_v45 = vpack.c.bf16 %v908_v43, %v905_v42 }
  0xce   : > { %817 = vst [vmem:[#allocation2 + $0x158] sm:$0xff] %v807_v44 }
  0xcf   : > { %3181 = vmatpush1.bf16.msra.mxu1 %v3180_v45 }
  0xd0   : > { %v804_v46 = vpop.permute.xlu1 %803  ;;  %v802_v47 = vpop.permute.xlu0 %801  ;;  %3182 = vmatprep.subr.bf16.mxu1 %v3445_v0 }
  0xd1   : > { %821 = vst.msk [vmem:[#allocation2 + $0x178] sm:$0xff] %vm530_vm0, %v804_v46  ;;  %v809_v48 = vsel %vm805_vm8, %v802_v47, %v804_v46 }
  0xd2   : > { %820 = vst [vmem:[#allocation2 + $0x170] sm:$0xff] %v809_v48  ;;  %v3153_v49 = vpack.c.bf16 %v809_v48, %v807_v44 }
  0xd4   : > { %v800_v50 = vpop.permute.xlu1 %799  ;;  %v794_v51 = vpop.permute.xlu0 %793  ;;  %3154 = vmatprep.subr.bf16.mxu0 %v3153_v49  ;;  %v911_v57 = vld [vmem:[#allocation2 + $0x160] sm:$0xff] }
  0xd5   : > { %v808_v52 = vsel %vm805_vm8, %v800_v50, %v802_v47  ;;  %v806_v53 = vsel %vm805_vm8, %v794_v51, %v796_v41 }
  0xd6   : > { %819 = vst [vmem:[#allocation2 + $0x168] sm:$0xff] %v808_v52  ;;  %816 = vst [vmem:[#allocation2 + $0x150] sm:$0xff] %v806_v53  ;;  %v3155_v54 = vpack.c.bf16 %v808_v52, %v806_v53 }
  0xd8   : > { %v839_v55 = vpop.permute.xlu1 %838  ;;  %v837_v56 = vpop.permute.xlu0 %836  ;;  %v914_v58 = vld [vmem:[#allocation2 + $0x178] sm:$0xff]  ;;  %3156 = vmatpush1.bf16.msra.mxu0 %v3155_v54 }
  0xd9   : > { %859 = vst.msk [vmem:[#allocation2 + $0x190] sm:$0xff] %vm530_vm0, %v839_v55  ;;  %v848_v59 = vsel %vm846_vm9, %v837_v56, %v839_v55  ;;  %v3183_v60 = vpack.c.bf16 %v914_v58, %v911_v57 }
  0xda   : > { %858 = vst [vmem:[#allocation2 + $0x188] sm:$0xff] %v848_v59 }
  0xdb   : > { %3184 = vmatpush1.bf16.msra.mxu1 %v3183_v60 }
  0xdc   : > { %v845_v61 = vpop.permute.xlu1 %844  ;;  %v843_v62 = vpop.permute.xlu0 %842  ;;  %3185 = vmatprep.subr.bf16.mxu1 %v3445_v0 }
  0xdd   : > { %862 = vst.msk [vmem:[#allocation2 + $0x1a8] sm:$0xff] %vm530_vm0, %v845_v61  ;;  %v850_v63 = vsel %vm846_vm9, %v843_v62, %v845_v61 }
  0xde   : > { %861 = vst [vmem:[#allocation2 + $0x1a0] sm:$0xff] %v850_v63  ;;  %v3157_v1 = vpack.c.bf16 %v850_v63, %v848_v59 }
  0xe0   : > { %v841_v2 = vpop.permute.xlu1 %840  ;;  %v835_v3 = vpop.permute.xlu0 %834  ;;  %3158 = vmatprep.subr.bf16.mxu0 %v3157_v1  ;;  %v917_v7 = vld [vmem:[#allocation2 + $0x190] sm:$0xff] }
  0xe1   : > { %v849_v4 = vsel %vm846_vm9, %v841_v2, %v843_v62  ;;  %v847_v5 = vsel %vm846_vm9, %v835_v3, %v837_v56 }
  0xe2   : > { %860 = vst [vmem:[#allocation2 + $0x198] sm:$0xff] %v849_v4  ;;  %857 = vst [vmem:[#allocation2 + $0x180] sm:$0xff] %v847_v5  ;;  %v3159_v6 = vpack.c.bf16 %v849_v4, %v847_v5 }
  0xe4   : > { %v920_v8 = vld [vmem:[#allocation2 + $0x1a8] sm:$0xff]  ;;  %3160 = vmatpush1.bf16.msra.mxu0 %v3159_v6 }
  0xe5   : > { %v3186_v10 = vpack.c.bf16 %v920_v8, %v917_v7  ;;  %v1496_v7 = vld [vmem:[%s4315_s4 + $0x8] sm:$0x3f]  ;;  %v1551_v8 = vld [vmem:[%s4316_s5] sm:$0x3f] }
  0xe7   : > { %3187 = vmatpush1.bf16.msra.mxu1 %v3186_v10  ;;  %1005 = vmatmul.mubr.f32.vlgmr.msra.gmra.mrb[0].mxu0 %v863_v9 }
  0xe8   : > { %3076 = vmatprep.mubr.msk.f32.mxu0 %vm933_vm1, %v866_v11  ;;  %3224 = vmatprep.subr.bf16.mxu1 %v3445_v0 }
  0xea   : > { %1082 = vmatmul.mubr.f32.vlgmr.msra.gmra.mrb[0].mxu1 %v863_v9 }
  0xeb   : > { %1011 = vmatmul.mubr.f32.gmra.mrb[2].mxu0 %v865_v12  ;;  %3078 = vmatprep.mubr.msk.f32.mxu1 %vm933_vm1, %v866_v11 }
  0xec   : > { %3079 = vmatprep.mubr.msk.f32.mxu0 %vm933_vm1, %v1496_v7 }
  0xee   : > { %1087 = vmatmul.mubr.f32.gmra.mrb[2].mxu1 %v865_v12 }
  0xef   : > { %3080 = vmatprep.mubr.msk.f32.mxu1 %vm933_vm1, %v1496_v7 }
  0xf1   : > { %v926_v17 = vpop.permute.xlu0 %925  ;;  %v931_v29 = vpop.permute.xlu1 %930 }
 0x1ba   : > { %v1006_v21 = vpop.f32.mrb[0].mxu0 }
 0x1bb   : > { %v1007_v22 = vadd.f32 %v1006_v21, %v926_v17  ;;  %v1008_v24 = vpop.f32.mrb[1].mxu0 }
 0x1bc   : > { %v1009_v25 = vadd.f32 %v1008_v24, %v926_v17 }
 0x1bd   : > { %v1083_v27 = vpop.f32.mrb[0].mxu1  ;;  %v1092_v28 = vmax.f32 %v1007_v22, 0.0 }
 0x1be   : > { %v1084_v30 = vadd.f32 %v1083_v27, %v926_v17  ;;  %v1085_v32 = vpop.f32.mrb[1].mxu1  ;;  %v1093_v33 = vmax.f32 %v1009_v25, 0.0  ;;  %v1012_v34 = vpop.f32.mrb[2].mxu0 }
 0x1bf   : > { %v1114_v35 = vmul.f32 %v3763_v23, %v1092_v28  ;;  %v1013_v36 = vadd.f32 %v1012_v34, %v931_v29  ;;  %v1014_v37 = vpop.f32.mrb[3].mxu0 }
 0x1c0   : > { %v1094_v38 = vmax.f32 %v1084_v30, 0.0  ;;  %v1115_v39 = vmul.f32 %v3765_v26, %v1093_v33  ;;  %v1015_v40 = vadd.f32 %v1014_v37, %v931_v29 }
 0x1c1   : > { %1120 = vst [vmem:[%s504_s18] sm:$0xff] %v1114_v35  ;;  %v1088_v41 = vpop.f32.mrb[2].mxu1  ;;  %v1095_v42 = vmax.f32 %v1013_v36, 0.0 }
 0x1c2   : > { %v1116_v43 = vmul.f32 %v3771_v31, %v1094_v38  ;;  %1121 = vst [vmem:[%s504_s18 + $0x8] sm:$0xff] %v1115_v39  ;;  %v1096_v44 = vmax.f32 %v1015_v40, 0.0  ;;  %v1089_v45 = vadd.f32 %v1088_v41, %v931_v29  ;;  %1134 = vrot.lane.b32.xlu0 %v1115_v39, %s3456_s27  ;;  %v1090_v46 = vpop.f32.mrb[3].mxu1 }
 0x1c3   : > { %v1117_v47 = vmul.f32 %v3763_v23, %v1095_v42 }
 0x1c4   : > { %1122 = vst.msk [vmem:[%s504_s18 + $0x10] sm:$0xff] %vm530_vm0, %v1116_v43  ;;  %1136 = vrot.lane.b32.xlu1 %v1116_v43, %s3456_s27  ;;  %v1118_v48 = vmul.f32 %v3765_v26, %v1096_v44  ;;  %v1097_v49 = vmax.f32 %v1089_v45, 0.0 }
 0x1c5   : > { %1123 = vst [vmem:[%s504_s18 + $0x18] sm:$0xff] %v1117_v47 }
 0x1c6   : > { %1124 = vst [vmem:[%s504_s18 + $0x20] sm:$0xff] %v1118_v48  ;;  %v1119_v50 = vmul.f32 %v3771_v31, %v1097_v49 }
 0x1c8   : > { %1125 = vst.msk [vmem:[%s504_s18 + $0x28] sm:$0xff] %vm530_vm0, %v1119_v50  ;;  %1132 = vrot.lane.b32.xlu1 %v1114_v35, %s3456_s27  ;;  %1142 = vrot.lane.b32.xlu0 %v1119_v50, %s3456_s27 }
 0x1cc   : > { %1140 = vrot.lane.b32.xlu1 %v1118_v48, %s3456_s27  ;;  %1138 = vrot.lane.b32.xlu0 %v1117_v47, %s3456_s27 }
 0x234   : > { %v1135_v51 = vpop.permute.xlu0 %1134 }
 0x236   : > { %v1137_v52 = vpop.permute.xlu1 %1136 }
 0x237   : > { %v1146_v53 = vsel %vm1144_vm11, %v1135_v51, %v1137_v52 }
 0x238   : > { %1159 = vst.msk [vmem:[#allocation5 + $0x10] sm:$0xff] %vm1158_vm12, %v1146_v53 }
 0x23a   : > { %v1133_v54 = vpop.permute.xlu1 %1132  ;;  %v1143_v55 = vpop.permute.xlu0 %1142 }
 0x23b   : > { %1156 = vst.msk [vmem:[#allocation5] sm:$0xff] %vm1155_vm13, %v1133_v54  ;;  %v1145_v56 = vsel %vm1144_vm11, %v1133_v54, %v1135_v51 }
 0x23e   : > { %v1141_v57 = vpop.permute.xlu1 %1140  ;;  %v1139_v58 = vpop.permute.xlu0 %1138 }
 0x23f   : > { %v1165_v59 = vld [vmem:[#allocation5 + $0x10] sm:$0xff]  ;;  %v1148_v60 = vsel %vm1144_vm11, %v1141_v57, %v1143_v55  ;;  %v3793_v61 = vsel %vm1144_vm11, %v1139_v58, %v1141_v57  ;;  %1160 = vst.msk [vmem:[#allocation5 + $0x18] sm:$0xff] %vm1155_vm13, %v1139_v58 }
 0x240   : > { %1171 = vst.msk [vmem:[#allocation3 + $0x10] sm:$0xff] %vm530_vm0, %v1165_v59  ;;  %1191 = vrot.lane.b32.xlu0 %v1165_v59, %s3446_s19  ;;  %v3188_v62 = vpack.c.bf16 %v3793_v61, %v1145_v56 }
 0x241   : > { %1162 = vst.msk [vmem:[#allocation5 + $0x28] sm:$0xff] %vm1158_vm12, %v1148_v60 }
 0x242   : > { %v1163_v63 = vld [vmem:[#allocation5] sm:$0xff]  ;;  %3189 = vmatprep.subr.bf16.mxu0 %v3188_v62 }
 0x243   : > { %1187 = vrot.lane.b32.xlu1 %v1163_v63, %s3446_s19 }
 0x244   : > { %1231 = vrot.lane.b32.xlu0 %v1165_v59, %s3447_s20 }
 0x246   : > { %v1166_v1 = vld [vmem:[#allocation5 + $0x18] sm:$0xff] }
 0x247   : > { %1227 = vrot.lane.b32.xlu1 %v1163_v63, %s3447_s20  ;;  %v3190_v3 = vpack.c.bf16 %v1166_v1, %v1163_v63  ;;  %v1499_v4 = vld [vmem:[#allocation3 + $0x10] sm:$0xff] }
 0x248   : > { %v1168_v2 = vld [vmem:[#allocation5 + $0x28] sm:$0xff]  ;;  %1271 = vrot.lane.b32.xlu0 %v1165_v59, %s3448_s21 }
 0x249   : > { %1174 = vst.msk [vmem:[#allocation3 + $0x28] sm:$0xff] %vm530_vm0, %v1168_v2  ;;  %3191 = vmatpush1.bf16.msra.mxu0 %v3190_v3 }
 0x24b   : > { %1267 = vrot.lane.b32.xlu1 %v1163_v63, %s3448_s21 }
 0x24c   : > { %1311 = vrot.lane.b32.xlu0 %v1165_v59, %s4335_s22 }
 0x24f   : > { %1307 = vrot.lane.b32.xlu1 %v1163_v63, %s4335_s22 }
 0x250   : > { %v1502_v5 = vld [vmem:[#allocation3 + $0x28] sm:$0xff]  ;;  %1351 = vrot.lane.b32.xlu0 %v1165_v59, %s4330_s23 }
 0x251   : > { %v3225_v6 = vpack.c.bf16 %v1502_v5, %v1499_v4 }
 0x253   : > { %3226 = vmatpush1.bf16.msra.mxu1 %v3225_v6  ;;  %1347 = vrot.lane.b32.xlu1 %v1163_v63, %s4330_s23 }
 0x254   : > { %3227 = vmatprep.subr.bf16.mxu1 %v3445_v0  ;;  %1391 = vrot.lane.b32.xlu0 %v1165_v59, %s4333_s24 }
 0x257   : > { %1387 = vrot.lane.b32.xlu1 %v1163_v63, %s4333_s24 }
 0x258   : > { %1431 = vrot.lane.b32.xlu0 %v1165_v59, %s4328_s25 }
 0x25b   : > { %1427 = vrot.lane.b32.xlu1 %v1163_v63, %s4328_s25 }
 0x25c   : > { %1471 = vrot.lane.b32.xlu0 %v1165_v59, %s4337_s26 }
 0x25f   : > { %1189 = vrot.lane.b32.xlu1 %v1145_v56, %s3446_s19 }
 0x260   : > { %1193 = vrot.lane.b32.xlu0 %v1166_v1, %s3446_s19 }
 0x263   : > { %1229 = vrot.lane.b32.xlu1 %v1145_v56, %s3447_s20 }
 0x264   : > { %1233 = vrot.lane.b32.xlu0 %v1166_v1, %s3447_s20 }
 0x267   : > { %1269 = vrot.lane.b32.xlu1 %v1145_v56, %s3448_s21 }
 0x268   : > { %1273 = vrot.lane.b32.xlu0 %v1166_v1, %s3448_s21 }
 0x26b   : > { %1309 = vrot.lane.b32.xlu1 %v1145_v56, %s4335_s22 }
 0x26c   : > { %1313 = vrot.lane.b32.xlu0 %v1166_v1, %s4335_s22 }
 0x26f   : > { %1349 = vrot.lane.b32.xlu1 %v1145_v56, %s4330_s23 }
 0x270   : > { %1353 = vrot.lane.b32.xlu0 %v1166_v1, %s4330_s23 }
 0x273   : > { %1389 = vrot.lane.b32.xlu1 %v1145_v56, %s4333_s24 }
 0x274   : > { %1393 = vrot.lane.b32.xlu0 %v1166_v1, %s4333_s24 }
 0x277   : > { %1429 = vrot.lane.b32.xlu1 %v1145_v56, %s4328_s25 }
 0x278   : > { %1433 = vrot.lane.b32.xlu0 %v1166_v1, %s4328_s25 }
 0x27b   : > { %1469 = vrot.lane.b32.xlu1 %v1145_v56, %s4337_s26 }
 0x27c   : > { %1197 = vrot.lane.b32.xlu0 %v1168_v2, %s3446_s19 }
 0x27f   : > { %1195 = vrot.lane.b32.xlu1 %v3793_v61, %s3446_s19 }
 0x280   : > { %1237 = vrot.lane.b32.xlu0 %v1168_v2, %s3447_s20 }
 0x283   : > { %1235 = vrot.lane.b32.xlu1 %v3793_v61, %s3447_s20 }
 0x284   : > { %1277 = vrot.lane.b32.xlu0 %v1168_v2, %s3448_s21 }
 0x287   : > { %1275 = vrot.lane.b32.xlu1 %v3793_v61, %s3448_s21 }
 0x288   : > { %1317 = vrot.lane.b32.xlu0 %v1168_v2, %s4335_s22 }
 0x28b   : > { %1315 = vrot.lane.b32.xlu1 %v3793_v61, %s4335_s22 }
 0x28c   : > { %1357 = vrot.lane.b32.xlu0 %v1168_v2, %s4330_s23 }
 0x28f   : > { %1355 = vrot.lane.b32.xlu1 %v3793_v61, %s4330_s23  ;;  %s494_s23 = scalar_lea.vmem %s4323_s12, %s4332_s17 }
 0x290   : > { %1397 = vrot.lane.b32.xlu0 %v1168_v2, %s4333_s24 }
 0x293   : > { %1395 = vrot.lane.b32.xlu1 %v3793_v61, %s4333_s24 }
 0x294   : > { %1437 = vrot.lane.b32.xlu0 %v1168_v2, %s4328_s25 }
 0x297   : > { %1435 = vrot.lane.b32.xlu1 %v3793_v61, %s4328_s25  ;;  %s4339_s25 = smov 91  }
 0x298   : > { %1477 = vrot.lane.b32.xlu0 %v1168_v2, %s4337_s26 }
 0x29b   : > { %1475 = vrot.lane.b32.xlu1 %v3793_v61, %s4337_s26 }
 0x29c   : > { %1473 = vrot.lane.b32.xlu0 %v1166_v1, %s4337_s26 }
 0x29f   : > { %1467 = vrot.lane.b32.xlu1 %v1163_v63, %s4337_s26 }
 0x2a3   : > { %1554 = vperm.xlu1 %3436, %v1551_v8  }
 0x2b2   : > { %v1192_v9 = vpop.permute.xlu0 %1191 }
 0x2b3   : > { %1211 = vst.msk [vmem:[#allocation3 + $0x40] sm:$0xff] %vm530_vm0, %v1192_v9 }
 0x2b5   : > { %v1188_v10 = vpop.permute.xlu1 %1187 }
 0x2b6   : > { %v1232_v11 = vpop.permute.xlu0 %1231 }
 0x2b7   : > { %1251 = vst.msk [vmem:[#allocation3 + $0x70] sm:$0xff] %vm530_vm0, %v1232_v11 }
 0x2b9   : > { %v1228_v12 = vpop.permute.xlu1 %1227 }
 0x2ba   : > { %v1272_v13 = vpop.permute.xlu0 %1271  ;;  %v1505_v58 = vld [vmem:[#allocation3 + $0x40] sm:$0xff] }
 0x2bb   : > { %1291 = vst.msk [vmem:[#allocation3 + $0xa0] sm:$0xff] %vm530_vm0, %v1272_v13 }
 0x2bd   : > { %v1268_v14 = vpop.permute.xlu1 %1267 }
 0x2be   : > { %v3868_v15 = vpop.permute.xlu0 %1311  ;;  %v1511_v6 = vld [vmem:[#allocation3 + $0x70] sm:$0xff] }
 0x2bf   : > { %1331 = vst.msk [vmem:[#allocation3 + $0xd0] sm:$0xff] %vm530_vm0, %v3868_v15 }
 0x2c1   : > { %v3872_v17 = vpop.permute.xlu1 %1307 }
 0x2c2   : > { %v3874_v18 = vpop.permute.xlu0 %1351 }
 0x2c3   : > { %1371 = vst.msk [vmem:[#allocation3 + $0x100] sm:$0xff] %vm530_vm0, %v3874_v18 }
 0x2c5   : > { %v3878_v19 = vpop.permute.xlu1 %1347 }
 0x2c6   : > { %v3880_v20 = vpop.permute.xlu0 %1391 }
 0x2c7   : > { %1411 = vst.msk [vmem:[#allocation3 + $0x130] sm:$0xff] %vm530_vm0, %v3880_v20 }
 0x2c9   : > { %v3884_v21 = vpop.permute.xlu1 %1387 }
 0x2ca   : > { %v3886_v22 = vpop.permute.xlu0 %1431 }
 0x2cb   : > { %1451 = vst.msk [vmem:[#allocation3 + $0x160] sm:$0xff] %vm530_vm0, %v3886_v22 }
 0x2cd   : > { %v3890_v24 = vpop.permute.xlu1 %1427 }
 0x2ce   : > { %v3892_v25 = vpop.permute.xlu0 %1471 }
 0x2cf   : > { %1491 = vst.msk [vmem:[#allocation3 + $0x190] sm:$0xff] %vm530_vm0, %v3892_v25 }
 0x2d1   : > { %v1190_v27 = vpop.permute.xlu1 %1189 }
 0x2d2   : > { %v1194_v28 = vpop.permute.xlu0 %1193  ;;  %v1199_v45 = vsel %vm559_vm2, %v1188_v10, %v1190_v27  ;;  %v1200_v46 = vsel %vm559_vm2, %v1190_v27, %v1192_v9 }
 0x2d5   : > { %v1230_v29 = vpop.permute.xlu1 %1229 }
 0x2d6   : > { %v1234_v30 = vpop.permute.xlu0 %1233  ;;  %v1239_v53 = vsel %vm600_vm3, %v1228_v12, %v1230_v29  ;;  %v1240_v54 = vsel %vm600_vm3, %v1230_v29, %v1232_v11  ;;  %v1517_v29 = vld [vmem:[#allocation3 + $0xa0] sm:$0xff] }
 0x2d9   : > { %v1270_v32 = vpop.permute.xlu1 %1269 }
 0x2da   : > { %v1274_v33 = vpop.permute.xlu0 %1273  ;;  %v1279_v63 = vsel %vm641_vm4, %v1268_v14, %v1270_v32  ;;  %v1280_v2 = vsel %vm641_vm4, %v1270_v32, %v1272_v13 }
 0x2dd   : > { %v1310_v34 = vpop.permute.xlu1 %1309 }
 0x2de   : > { %v1314_v35 = vpop.permute.xlu0 %1313  ;;  %v1319_v11 = vsel %vm682_vm5, %v3872_v17, %v1310_v34  ;;  %v1320_v13 = vsel %vm682_vm5, %v1310_v34, %v3868_v15 }
 0x2e1   : > { %v3896_v36 = vpop.permute.xlu1 %1349 }
 0x2e2   : > { %v3898_v37 = vpop.permute.xlu0 %1353  ;;  %v1360_v34 = vsel %vm723_vm6, %v3896_v36, %v3874_v18 }
 0x2e5   : > { %v3900_v38 = vpop.permute.xlu1 %1389 }
 0x2e6   : > { %v3902_v39 = vpop.permute.xlu0 %1393  ;;  %v1399_v18 = vsel %vm764_vm7, %v3884_v21, %v3900_v38 }
 0x2e9   : > { %v3904_v40 = vpop.permute.xlu1 %1429 }
 0x2ea   : > { %v3906_v41 = vpop.permute.xlu0 %1433 }
 0x2ed   : > { %v3908_v42 = vpop.permute.xlu1 %1469 }
 0x2ee   : > { %v1198_v43 = vpop.permute.xlu0 %1197 }
 0x2ef   : > { %1214 = vst.msk [vmem:[#allocation3 + $0x58] sm:$0xff] %vm530_vm0, %v1198_v43 }
 0x2f1   : > { %v1196_v44 = vpop.permute.xlu1 %1195 }
 0x2f2   : > { %v1201_v47 = vsel %vm559_vm2, %v1194_v28, %v1196_v44  ;;  %v1202_v48 = vsel %vm559_vm2, %v1196_v44, %v1198_v43  ;;  %v1238_v49 = vpop.permute.xlu0 %1237  ;;  %v1359_v43 = vsel %vm723_vm6, %v3878_v19, %v3896_v36 }
 0x2f3   : > { %1254 = vst.msk [vmem:[#allocation3 + $0x88] sm:$0xff] %vm530_vm0, %v1238_v49  ;;  %v3192_v50 = vpack.c.bf16 %v1202_v48, %v1200_v46  ;;  %v3194_v51 = vpack.c.bf16 %v1201_v47, %v1199_v45  ;;  %v1523_v46 = vld [vmem:[#allocation3 + $0xd0] sm:$0xff] }
 0x2f5   : > { %v1236_v52 = vpop.permute.xlu1 %1235  ;;  %3193 = vmatprep.subr.bf16.mxu0 %v3192_v50 }
 0x2f6   : > { %v1241_v55 = vsel %vm600_vm3, %v1234_v30, %v1236_v52  ;;  %v1242_v56 = vsel %vm600_vm3, %v1236_v52, %v1238_v49  ;;  %v1278_v57 = vpop.permute.xlu0 %1277  ;;  %v1508_v59 = vld [vmem:[#allocation3 + $0x58] sm:$0xff]  ;;  %3195 = vmatpush1.bf16.msra.mxu0 %v3194_v51 }
 0x2f7   : > { %1294 = vst.msk [vmem:[#allocation3 + $0xb8] sm:$0xff] %vm530_vm0, %v1278_v57  ;;  %v3228_v60 = vpack.c.bf16 %v1508_v59, %v1505_v58  ;;  %v3196_v61 = vpack.c.bf16 %v1242_v56, %v1240_v54  ;;  %v3198_v62 = vpack.c.bf16 %v1241_v55, %v1239_v53  ;;  %v1529_v53 = vld [vmem:[#allocation3 + $0x100] sm:$0xff] }
 0x2f9   : > { %v1276_v1 = vpop.permute.xlu1 %1275  ;;  %3229 = vmatpush1.bf16.msra.mxu1 %v3228_v60  ;;  %3197 = vmatprep.subr.bf16.mxu0 %v3196_v61  ;;  %v1535_v60 = vld [vmem:[#allocation3 + $0x130] sm:$0xff] }
 0x2fa   : > { %v1281_v3 = vsel %vm641_vm4, %v1274_v33, %v1276_v1  ;;  %v1282_v4 = vsel %vm641_vm4, %v1276_v1, %v1278_v57  ;;  %v1318_v5 = vpop.permute.xlu0 %1317  ;;  %3230 = vmatprep.subr.bf16.mxu1 %v3445_v0  ;;  %v1514_v7 = vld [vmem:[#allocation3 + $0x88] sm:$0xff]  ;;  %3199 = vmatpush1.bf16.msra.mxu0 %v3198_v62 }
 0x2fb   : > { %1334 = vst.msk [vmem:[#allocation3 + $0xe8] sm:$0xff] %vm530_vm0, %v1318_v5  ;;  %v3231_v8 = vpack.c.bf16 %v1514_v7, %v1511_v6  ;;  %v3200_v9 = vpack.c.bf16 %v1282_v4, %v1280_v2  ;;  %v3202_v10 = vpack.c.bf16 %v1281_v3, %v1279_v63 }
 0x2fd   : > { %v1316_v12 = vpop.permute.xlu1 %1315  ;;  %3232 = vmatpush1.bf16.msra.mxu1 %v3231_v8  ;;  %3201 = vmatprep.subr.bf16.mxu0 %v3200_v9 }
 0x2fe   : > { %v1321_v14 = vsel %vm682_vm5, %v1314_v35, %v1316_v12  ;;  %v1322_v27 = vsel %vm682_vm5, %v1316_v12, %v1318_v5  ;;  %v1358_v28 = vpop.permute.xlu0 %1357  ;;  %3233 = vmatprep.subr.bf16.mxu1 %v3445_v0  ;;  %v1520_v30 = vld [vmem:[#allocation3 + $0xb8] sm:$0xff]  ;;  %3203 = vmatpush1.bf16.msra.mxu0 %v3202_v10  ;;  %v1495_v12 = vld [vmem:[%s4315_s4] sm:$0x3f] }
 0x2ff   : > { %1374 = vst.msk [vmem:[#allocation3 + $0x118] sm:$0xff] %vm530_vm0, %v1358_v28  ;;  %v3234_v32 = vpack.c.bf16 %v1520_v30, %v1517_v29  ;;  %v3204_v17 = vpack.c.bf16 %v1322_v27, %v1320_v13  ;;  %v3206_v33 = vpack.c.bf16 %v1321_v14, %v1319_v11 }
 0x301   : > { %v1356_v15 = vpop.permute.xlu1 %1355  ;;  %3235 = vmatpush1.bf16.msra.mxu1 %v3234_v32  ;;  %3205 = vmatprep.subr.bf16.mxu0 %v3204_v17 }
 0x302   : > { %v1361_v35 = vsel %vm723_vm6, %v3898_v37, %v1356_v15  ;;  %v1362_v44 = vsel %vm723_vm6, %v1356_v15, %v1358_v28  ;;  %v1398_v45 = vpop.permute.xlu0 %1397  ;;  %3236 = vmatprep.subr.bf16.mxu1 %v3445_v0  ;;  %v1526_v47 = vld [vmem:[#allocation3 + $0xe8] sm:$0xff]  ;;  %3207 = vmatpush1.bf16.msra.mxu0 %v3206_v33  ;;  %v1400_v37 = vsel %vm764_vm7, %v3900_v38, %v3880_v20 }
 0x303   : > { %1414 = vst.msk [vmem:[#allocation3 + $0x148] sm:$0xff] %vm530_vm0, %v1398_v45  ;;  %v3237_v19 = vpack.c.bf16 %v1526_v47, %v1523_v46  ;;  %v3208_v48 = vpack.c.bf16 %v1362_v44, %v1360_v34  ;;  %v3210_v49 = vpack.c.bf16 %v1361_v35, %v1359_v43  ;;  %v1439_v20 = vsel %vm805_vm8, %v3890_v24, %v3904_v40 }
 0x305   : > { %v1396_v36 = vpop.permute.xlu1 %1395  ;;  %3238 = vmatpush1.bf16.msra.mxu1 %v3237_v19  ;;  %3209 = vmatprep.subr.bf16.mxu0 %v3208_v48  ;;  %v4020_v48 = vld [vmem:[%s4318_s7] sm:$0xff] }
 0x306   : > { %v1401_v50 = vsel %vm764_vm7, %v3902_v39, %v1396_v36  ;;  %v1402_v51 = vsel %vm764_vm7, %v1396_v36, %v1398_v45  ;;  %v1438_v52 = vpop.permute.xlu0 %1437  ;;  %3239 = vmatprep.subr.bf16.mxu1 %v3445_v0  ;;  %v1532_v54 = vld [vmem:[#allocation3 + $0x118] sm:$0xff]  ;;  %3211 = vmatpush1.bf16.msra.mxu0 %v3210_v49  ;;  %v1440_v39 = vsel %vm805_vm8, %v3904_v40, %v3886_v22  ;;  %v2297_v49 = vld [vmem:[%s4319_s8] sm:$0xff] }
 0x307   : > { %1454 = vst.msk [vmem:[#allocation3 + $0x178] sm:$0xff] %vm530_vm0, %v1438_v52  ;;  %v3240_v21 = vpack.c.bf16 %v1532_v54, %v1529_v53  ;;  %v3212_v55 = vpack.c.bf16 %v1402_v51, %v1400_v37  ;;  %v3214_v56 = vpack.c.bf16 %v1401_v50, %v1399_v18  ;;  %v1480_v22 = vsel %vm846_vm9, %v3908_v42, %v3892_v25  ;;  %v1547_v25 = vld [vmem:[#allocation3 + $0x190] sm:$0xff]  ;;  %v2298_v18 = vld [vmem:[%s4319_s8 + $0x8] sm:$0xff] }
 0x309   : > { %v1436_v38 = vpop.permute.xlu1 %1435  ;;  %3241 = vmatpush1.bf16.msra.mxu1 %v3240_v21  ;;  %3213 = vmatprep.subr.bf16.mxu0 %v3212_v55 }
 0x30a   : > { %v1441_v57 = vsel %vm805_vm8, %v3906_v41, %v1436_v38  ;;  %v1442_v58 = vsel %vm805_vm8, %v1436_v38, %v1438_v52  ;;  %v1478_v59 = vpop.permute.xlu0 %1477  ;;  %3242 = vmatprep.subr.bf16.mxu1 %v3445_v0  ;;  %v1538_v61 = vld [vmem:[#allocation3 + $0x148] sm:$0xff]  ;;  %3215 = vmatpush1.bf16.msra.mxu0 %v3214_v56  ;;  %v1541_v41 = vld [vmem:[#allocation3 + $0x160] sm:$0xff] }
 0x30b   : > { %1494 = vst.msk [vmem:[#allocation3 + $0x1a8] sm:$0xff] %vm530_vm0, %v1478_v59  ;;  %v3243_v24 = vpack.c.bf16 %v1538_v61, %v1535_v60  ;;  %v3216_v62 = vpack.c.bf16 %v1442_v58, %v1440_v39  ;;  %v3218_v63 = vpack.c.bf16 %v1441_v57, %v1439_v20 }
 0x30d   : > { %v1476_v1 = vpop.permute.xlu1 %1475  ;;  %3244 = vmatpush1.bf16.msra.mxu1 %v3243_v24  ;;  %3217 = vmatprep.subr.bf16.mxu0 %v3216_v62 }
 0x30e   : > { %v1482_v40 = vsel %vm846_vm9, %v1476_v1, %v1478_v59  ;;  %3245 = vmatprep.subr.bf16.mxu1 %v3445_v0  ;;  %v1544_v2 = vld [vmem:[#allocation3 + $0x178] sm:$0xff]  ;;  %3219 = vmatpush1.bf16.msra.mxu0 %v3218_v63  ;;  %v1474_v3 = vpop.permute.xlu0 %1473 }
 0x30f   : > { %v3246_v4 = vpack.c.bf16 %v1544_v2, %v1541_v41  ;;  %v3220_v5 = vpack.c.bf16 %v1482_v40, %v1480_v22  ;;  %v1481_v8 = vsel %vm846_vm9, %v1474_v3, %v1476_v1 }
 0x311   : > { %v1468_v6 = vpop.permute.xlu1 %1467  ;;  %3247 = vmatpush1.bf16.msra.mxu1 %v3246_v4  ;;  %3221 = vmatprep.subr.bf16.mxu0 %v3220_v5 }
 0x312   : > { %v1479_v7 = vsel %vm846_vm9, %v1468_v6, %v3908_v42  ;;  %3248 = vmatprep.subr.bf16.mxu1 %v3445_v0  ;;  %v1550_v9 = vld [vmem:[#allocation3 + $0x1a8] sm:$0xff] }
 0x313   : > { %v3249_v10 = vpack.c.bf16 %v1550_v9, %v1547_v25  ;;  %v3222_v11 = vpack.c.bf16 %v1481_v8, %v1479_v7 }
 0x315   : > { %3250 = vmatpush1.bf16.msra.mxu1 %v3249_v10  ;;  %3223 = vmatpush1.bf16.msra.mxu0 %v3222_v11 }
 0x318   : > { %1696 = vmatmul.mubr.f32.vlgmr.msra.gmra.mrb[4].mxu1 %v1495_v12  ;;  %1625 = vmatmul.mubr.f32.vlgmr.msra.gmra.mrb[4].mxu0 %v1495_v12 }
 0x319   : > { %2051 = vmatprep.mubr.f32.mxu0 %v3455_v16 }
 0x322   : > { %v1555_v42 = vpop.permute.xlu1 %1554 }
 0x3eb   : > { %v1697_v13 = vpop.f32.mrb[4].mxu1  ;;  %v1626_v14 = vpop.f32.mrb[4].mxu0 }
 0x3ec   : > { %v1698_v27 = vadd.f32 %v1697_v13, %v1555_v42  ;;  %v1627_v28 = vadd.f32 %v1626_v14, %v1555_v42  ;;  %v1628_v29 = vpop.f32.mrb[5].mxu0  ;;  %v1699_v30 = vpop.f32.mrb[5].mxu1 }
 0x3ed   : > { %v1629_v32 = vadd.f32 %v1628_v29, %v1555_v42 }
 0x3ee   : > { %v1703_v17 = vmul.f32 %v1698_v27, %v3771_v31  ;;  %v1701_v33 = vmul.f32 %v1627_v28, %v3763_v23 }
 0x3ef   : > { %v1702_v43 = vmul.f32 %v1629_v32, %v3765_v26 }
 0x3f0   : > { %1704 = vst [vmem:[%s494_s23] sm:$0x3f] %v1701_v33  ;;  %1707 = vst.msk [vmem:[%s494_s23 + $0x10] sm:$0x3f] %vm1706_vm14, %v1703_v17  ;;  %1711 = vrot.lane.b32.xlu0 %v1701_v33, %s3456_s27 }
 0x3f1   : > { %1705 = vst [vmem:[%s494_s23 + $0x8] sm:$0x3f] %v1702_v43  ;;  %1713 = vrot.lane.b32.xlu1 %v1702_v43, %s3456_s27  ;;  %s4338_s23 = smov 108  }
 0x3f4   : > { %1715 = vrot.lane.b32.xlu0 %v1703_v17, %s3456_s27 }
 0x462   : > { %v1712_v15 = vpop.permute.xlu0 %1711 }
 0x463   : > { %1723 = vst.msk [vmem:[#allocation6] sm:$0x3f] %vm1722_vm15, %v1712_v15  ;;  %v1714_v34 = vpop.permute.xlu1 %1713  ;;  %vm1980_vm15 = vcmask 588800  }
 0x464   : > { %v1717_v35 = vsel %vm1144_vm11, %v1712_v15, %v1714_v34  ;;  %3122 = vmatprep.mubr.msk.f32.mxu1 %vm1980_vm15, %v4020_v48 }
 0x465   : > { %1724 = vst [vmem:[#allocation6 + $0x8] sm:$0x3f] %v1717_v35 }
 0x466   : > { %v1716_v44 = vpop.permute.xlu0 %1715 }
 0x467   : > { %v1718_v45 = vsel %vm1144_vm11, %v1714_v34, %v1716_v44 }
 0x468   : > { %1726 = vst.msk [vmem:[#allocation6 + $0x10] sm:$0x3f] %vm1725_vm10, %v1718_v45 }
 0x46a   : > { %v1727_v46 = vld [vmem:[#allocation6] sm:$0xff] }
 0x46b   : > { %1759 = vrot.lane.b32.xlu0 %v1727_v46, %s3447_s20  ;;  %1739 = vrot.lane.b32.xlu1 %v1727_v46, %s3446_s19 }
 0x46c   : > { %v1728_v47 = vld [vmem:[#allocation6 + $0x8] sm:$0xff] }
 0x46f   : > { %v1729_v19 = vld [vmem:[#allocation6 + $0x10] sm:$0xff]  ;;  %1799 = vrot.lane.b32.xlu0 %v1727_v46, %s4335_s22  ;;  %1779 = vrot.lane.b32.xlu1 %v1727_v46, %s3448_s21 }
 0x470   : > { %1732 = vst.msk [vmem:[#allocation4 + $0x10] sm:$0xff] %vm530_vm0, %v1729_v19 }
 0x473   : > { %1839 = vrot.lane.b32.xlu0 %v1727_v46, %s4333_s24  ;;  %1819 = vrot.lane.b32.xlu1 %v1727_v46, %s4338_s23 }
 0x477   : > { %1741 = vrot.lane.b32.xlu1 %v1728_v47, %s3446_s19  ;;  %1743 = vrot.lane.b32.xlu0 %v1729_v19, %s3446_s19  ;;  %v1955_v24 = vld [vmem:[#allocation4 + $0x10] sm:$0xff] }
 0x47b   : > { %1763 = vrot.lane.b32.xlu1 %v1729_v19, %s3447_s20  ;;  %1761 = vrot.lane.b32.xlu0 %v1728_v47, %s3447_s20 }
 0x47f   : > { %1783 = vrot.lane.b32.xlu1 %v1729_v19, %s3448_s21  ;;  %1781 = vrot.lane.b32.xlu0 %v1728_v47, %s3448_s21 }
 0x483   : > { %1803 = vrot.lane.b32.xlu1 %v1729_v19, %s4335_s22  ;;  %1801 = vrot.lane.b32.xlu0 %v1728_v47, %s4335_s22 }
 0x487   : > { %1823 = vrot.lane.b32.xlu1 %v1729_v19, %s4338_s23  ;;  %1821 = vrot.lane.b32.xlu0 %v1728_v47, %s4338_s23 }
 0x48b   : > { %1843 = vrot.lane.b32.xlu1 %v1729_v19, %s4333_s24  ;;  %1841 = vrot.lane.b32.xlu0 %v1728_v47, %s4333_s24  ;;  %s4096_s24 = scalar_lea.vmem %s4324_s13, %s3543_s15  ;;  %s4340_s15 = smov 109  }
 0x48f   : > { %1863 = vrot.lane.b32.xlu1 %v1729_v19, %s4339_s25  ;;  %1861 = vrot.lane.b32.xlu0 %v1728_v47, %s4339_s25 }
 0x493   : > { %1859 = vrot.lane.b32.xlu1 %v1727_v46, %s4339_s25  ;;  %1881 = vrot.lane.b32.xlu0 %v1728_v47, %s4337_s26 }
 0x497   : > { %1883 = vrot.lane.b32.xlu1 %v1729_v19, %s4337_s26  ;;  %1879 = vrot.lane.b32.xlu0 %v1727_v46, %s4337_s26  ;;  %v1897_v19 = vld [vmem:[#allocation2] sm:$0xff] }
 0x49b   : > { %2301 = vperm.xlu1 %3436, %v2297_v49   ;;  %2306 = vperm.xlu0 %3435, %v2298_v18   ;;  %v1900_v49 = vld [vmem:[#allocation2 + $0x18] sm:$0xff] }
 0x4dd   : > { %v1740_v36 = vpop.permute.xlu1 %1739  ;;  %v1760_v37 = vpop.permute.xlu0 %1759 }
 0x4e1   : > { %v1780_v50 = vpop.permute.xlu1 %1779  ;;  %v1800_v51 = vpop.permute.xlu0 %1799 }
 0x4e5   : > { %v1820_v52 = vpop.permute.xlu1 %1819  ;;  %v1840_v53 = vpop.permute.xlu0 %1839 }
 0x4e9   : > { %v1742_v54 = vpop.permute.xlu1 %1741  ;;  %v1744_v21 = vpop.permute.xlu0 %1743 }
 0x4ea   : > { %v1745_v55 = vsel %vm559_vm2, %v1740_v36, %v1742_v54  ;;  %v1746_v56 = vsel %vm559_vm2, %v1742_v54, %v1744_v21  ;;  %1752 = vst.msk [vmem:[#allocation4 + $0x28] sm:$0xff] %vm530_vm0, %v1744_v21  ;;  %v3285_v21 = vpack.c.bf16 %v1900_v49, %v1897_v19  ;;  %v1933_v49 = vld [vmem:[#allocation2 + $0x120] sm:$0xff] }
 0x4eb   : > { %v3251_v20 = vpack.c.bf16 %v1746_v56, %v1728_v47  ;;  %v3253_v38 = vpack.c.bf16 %v1745_v55, %v1727_v46  ;;  %v1898_v46 = vld [vmem:[#allocation2 + $0x8] sm:$0xff]  ;;  %v1901_v47 = vld [vmem:[#allocation2 + $0x20] sm:$0xff]  ;;  %v1904_v55 = vld [vmem:[#allocation2 + $0x38] sm:$0xff] }
 0x4ec   : > { %v3283_v54 = vpack.c.bf16 %v1901_v47, %v1898_v46  ;;  %v1907_v56 = vld [vmem:[#allocation2 + $0x50] sm:$0xff]  ;;  %v1934_v46 = vld [vmem:[#allocation2 + $0x128] sm:$0xff] }
 0x4ed   : > { %v1764_v39 = vpop.permute.xlu1 %1763  ;;  %v1762_v57 = vpop.permute.xlu0 %1761  ;;  %3252 = vmatprep.subr.bf16.mxu0 %v3251_v20  ;;  %v1903_v20 = vld [vmem:[#allocation2 + $0x30] sm:$0xff] }
 0x4ee   : > { %1772 = vst.msk [vmem:[#allocation4 + $0x40] sm:$0xff] %vm530_vm0, %v1764_v39  ;;  %v1765_v58 = vsel %vm600_vm3, %v1760_v37, %v1762_v57  ;;  %v1766_v59 = vsel %vm600_vm3, %v1762_v57, %v1764_v39  ;;  %3254 = vmatpush1.bf16.msra.mxu0 %v3253_v38  ;;  %v1899_v38 = vld [vmem:[#allocation2 + $0x10] sm:$0xff]  ;;  %v1902_v39 = vld [vmem:[#allocation2 + $0x28] sm:$0xff]  ;;  %v3287_v57 = vpack.c.bf16 %v1907_v56, %v1904_v55 }
 0x4ef   : > { %v1923_v47 = vld [vmem:[#allocation2 + $0xd0] sm:$0xff]  ;;  %v1942_v55 = vld [vmem:[#allocation2 + $0x168] sm:$0xff] }
 0x4f1   : > { %v1784_v60 = vpop.permute.xlu1 %1783  ;;  %v1782_v61 = vpop.permute.xlu0 %1781  ;;  %v1958_v62 = vld [vmem:[#allocation4 + $0x28] sm:$0xff] }
 0x4f2   : > { %1792 = vst.msk [vmem:[#allocation4 + $0x58] sm:$0xff] %vm530_vm0, %v1784_v60  ;;  %v1785_v63 = vsel %vm641_vm4, %v1780_v50, %v1782_v61  ;;  %v1786_v1 = vsel %vm641_vm4, %v1782_v61, %v1784_v60  ;;  %v3267_v22 = vpack.c.bf16 %v1958_v62, %v1955_v24  ;;  %v1952_v61 = vld [vmem:[%s4318_s7 + $0x8] sm:$0xff]  ;;  %v3320_v24 = vpack.c.bf16 %v1902_v39, %v1899_v38 }
 0x4f3   : > { %v3255_v40 = vpack.c.bf16 %v1786_v1, %v1766_v59  ;;  %v3257_v41 = vpack.c.bf16 %v1785_v63, %v1765_v58  ;;  %v1906_v58 = vld [vmem:[#allocation2 + $0x48] sm:$0xff]  ;;  %v1913_v59 = vld [vmem:[#allocation2 + $0x80] sm:$0xff] }
 0x4f4   : > { %3268 = vmatprep.subr.bf16.mxu1 %v3267_v22  ;;  %v3289_v62 = vpack.c.bf16 %v1906_v58, %v1903_v20  ;;  %v1910_v63 = vld [vmem:[#allocation2 + $0x68] sm:$0xff]  ;;  %v1909_v1 = vld [vmem:[#allocation2 + $0x60] sm:$0xff]  ;;  %v1935_v58 = vld [vmem:[#allocation2 + $0x130] sm:$0xff] }
 0x4f5   : > { %v1804_v2 = vpop.permute.xlu1 %1803  ;;  %3270 = vmatpush3.bf16.msra.mxu1 %v3267_v22  ;;  %v1802_v3 = vpop.permute.xlu0 %1801  ;;  %3256 = vmatprep.subr.bf16.mxu0 %v3255_v40  ;;  %v1961_v8 = vld [vmem:[#allocation4 + $0x40] sm:$0xff]  ;;  %v1912_v22 = vld [vmem:[#allocation2 + $0x78] sm:$0xff]  ;;  %v1919_v40 = vld [vmem:[#allocation2 + $0xb0] sm:$0xff] }
 0x4f6   : > { %1812 = vst.msk [vmem:[#allocation4 + $0x70] sm:$0xff] %vm530_vm0, %v1804_v2  ;;  %v1805_v4 = vsel %vm682_vm5, %v1800_v51, %v1802_v3  ;;  %v1806_v5 = vsel %vm682_vm5, %v1802_v3, %v1804_v2  ;;  %3258 = vmatpush1.bf16.msra.mxu0 %v3257_v41  ;;  %v1908_v41 = vld [vmem:[#allocation2 + $0x58] sm:$0xff]  ;;  %v1894_v2 = vld [vmem:[%s4317_s6 + $0x8] sm:$0xff]  ;;  %v3293_v3 = vpack.c.bf16 %v1912_v22, %v1909_v1  ;;  %v1949_v20 = vld [vmem:[#allocation2 + $0x1a0] sm:$0xff] }
 0x4f7   : > { %v1938_v38 = vld [vmem:[#allocation2 + $0x148] sm:$0xff]  ;;  %v1941_v1 = vld [vmem:[#allocation2 + $0x160] sm:$0xff] }
 0x4f9   : > { %v1824_v6 = vpop.permute.xlu1 %1823  ;;  %v1822_v7 = vpop.permute.xlu0 %1821  ;;  %v1964_v25 = vld [vmem:[#allocation4 + $0x58] sm:$0xff] }
 0x4fa   : > { %1832 = vst.msk [vmem:[#allocation4 + $0x88] sm:$0xff] %vm530_vm0, %v1824_v6  ;;  %v1825_v9 = vsel %vm723_vm6, %v1820_v52, %v1822_v7  ;;  %v1826_v10 = vsel %vm723_vm6, %v1822_v7, %v1824_v6  ;;  %v3271_v11 = vpack.c.bf16 %v1964_v25, %v1961_v8  ;;  %v1915_v6 = vld [vmem:[#allocation2 + $0x90] sm:$0xff]  ;;  %v1918_v7 = vld [vmem:[#allocation2 + $0xa8] sm:$0xff]  ;;  %v1925_v25 = vld [vmem:[#allocation2 + $0xe0] sm:$0xff] }
 0x4fb   : > { %v3259_v12 = vpack.c.bf16 %v1826_v10, %v1806_v5  ;;  %v3261_v42 = vpack.c.bf16 %v1825_v9, %v1805_v4  ;;  %v1916_v4 = vld [vmem:[#allocation2 + $0x98] sm:$0xff]  ;;  %v1914_v9 = vld [vmem:[#allocation2 + $0x88] sm:$0xff]  ;;  %v3297_v10 = vpack.c.bf16 %v1918_v7, %v1915_v6 }
 0x4fc   : > { %3272 = vmatprep.subr.bf16.mxu1 %v3271_v11  ;;  %v3295_v5 = vpack.c.bf16 %v1919_v40, %v1916_v4  ;;  %v1950_v40 = vld [vmem:[#allocation2 + $0x1a8] sm:$0xff] }
 0x4fd   : > { %v1844_v13 = vpop.permute.xlu1 %1843  ;;  %3274 = vmatpush3.bf16.msra.mxu1 %v3271_v11  ;;  %v1842_v14 = vpop.permute.xlu0 %1841  ;;  %3260 = vmatprep.subr.bf16.mxu0 %v3259_v12  ;;  %v1967_v32 = vld [vmem:[#allocation4 + $0x70] sm:$0xff]  ;;  %v1922_v11 = vld [vmem:[#allocation2 + $0xc8] sm:$0xff] }
 0x4fe   : > { %1852 = vst.msk [vmem:[#allocation4 + $0xa0] sm:$0xff] %vm530_vm0, %v1844_v13  ;;  %v1845_v27 = vsel %vm764_vm7, %v1840_v53, %v1842_v14  ;;  %v1846_v28 = vsel %vm764_vm7, %v1842_v14, %v1844_v13  ;;  %3262 = vmatpush1.bf16.msra.mxu0 %v3261_v42  ;;  %v1911_v12 = vld [vmem:[#allocation2 + $0x70] sm:$0xff]  ;;  %v3299_v42 = vpack.c.bf16 %v1925_v25, %v1922_v11  ;;  %v1921_v13 = vld [vmem:[#allocation2 + $0xc0] sm:$0xff]  ;;  %v1924_v14 = vld [vmem:[#allocation2 + $0xd8] sm:$0xff] }
 0x501   : > { %v1864_v29 = vpop.permute.xlu1 %1863  ;;  %v1862_v30 = vpop.permute.xlu0 %1861  ;;  %v1970_v17 = vld [vmem:[#allocation4 + $0x88] sm:$0xff] }
 0x502   : > { %1872 = vst.msk [vmem:[#allocation4 + $0xb8] sm:$0xff] %vm530_vm0, %v1864_v29  ;;  %v1866_v33 = vsel %vm805_vm8, %v1862_v30, %v1864_v29  ;;  %v3275_v43 = vpack.c.bf16 %v1970_v17, %v1967_v32  ;;  %v1920_v29 = vld [vmem:[#allocation2 + $0xb8] sm:$0xff]  ;;  %v1917_v17 = vld [vmem:[#allocation2 + $0xa0] sm:$0xff] }
 0x503   : > { %v3263_v15 = vpack.c.bf16 %v1866_v33, %v1846_v28  ;;  %v1931_v28 = vld [vmem:[#allocation2 + $0x110] sm:$0xff]  ;;  %v1928_v32 = vld [vmem:[#allocation2 + $0xf8] sm:$0xff] }
 0x504   : > { %3276 = vmatprep.subr.bf16.mxu1 %v3275_v43  ;;  %v3303_v33 = vpack.c.bf16 %v1931_v28, %v1928_v32 }
 0x505   : > { %v1860_v34 = vpop.permute.xlu1 %1859  ;;  %3278 = vmatpush3.bf16.msra.mxu1 %v3275_v43  ;;  %v1882_v35 = vpop.permute.xlu0 %1881  ;;  %3264 = vmatprep.subr.bf16.mxu0 %v3263_v15  ;;  %v1973_v37 = vld [vmem:[#allocation4 + $0xa0] sm:$0xff]  ;;  %v1927_v43 = vld [vmem:[#allocation2 + $0xf0] sm:$0xff]  ;;  %v1930_v15 = vld [vmem:[#allocation2 + $0x108] sm:$0xff] }
 0x506   : > { %v1865_v44 = vsel %vm805_vm8, %v1860_v34, %v1862_v30  ;;  %v3301_v30 = vpack.c.bf16 %v1924_v14, %v1921_v13  ;;  %v3329_v34 = vpack.c.bf16 %v1920_v29, %v1917_v17 }
 0x507   : > { %v3265_v45 = vpack.c.bf16 %v1865_v44, %v1845_v27  ;;  %v3326_v27 = vpack.c.bf16 %v1914_v9, %v1911_v12  ;;  %v1926_v44 = vld [vmem:[#allocation2 + $0xe8] sm:$0xff] }
 0x509   : > { %v1884_v18 = vpop.permute.xlu1 %1883  ;;  %v1880_v36 = vpop.permute.xlu0 %1879  ;;  %v1976_v50 = vld [vmem:[#allocation4 + $0xb8] sm:$0xff]  ;;  %3266 = vmatpush1.bf16.msra.mxu0 %v3265_v45  ;;  %v3305_v45 = vpack.c.bf16 %v1930_v15, %v1927_v43 }
 0x50a   : > { %v1886_v51 = vsel %vm846_vm9, %v1882_v35, %v1884_v18  ;;  %1892 = vst.msk [vmem:[#allocation4 + $0xd0] sm:$0xff] %vm530_vm0, %v1884_v18  ;;  %v1885_v52 = vsel %vm846_vm9, %v1880_v36, %v1882_v35  ;;  %v3279_v53 = vpack.c.bf16 %v1976_v50, %v1973_v37  ;;  %v1937_v35 = vld [vmem:[#allocation2 + $0x140] sm:$0xff]  ;;  %v1936_v18 = vld [vmem:[#allocation2 + $0x138] sm:$0xff]  ;;  %v3332_v36 = vpack.c.bf16 %v1926_v44, %v1923_v47  ;;  %v1943_v37 = vld [vmem:[#allocation2 + $0x170] sm:$0xff] }
 0x50b   : > { %2003 = vmatprep.subr.mxu0 %v1886_v51  ;;  %v3307_v19 = vpack.c.bf16 %v1937_v35, %v1934_v46  ;;  %v1932_v50 = vld [vmem:[#allocation2 + $0x118] sm:$0xff]  ;;  %v3309_v51 = vpack.c.bf16 %v1936_v18, %v1933_v49 }
 0x50c   : > { %3280 = vmatprep.subr.bf16.mxu1 %v3279_v53 }
 0x50d   : > { %3282 = vmatpush3.bf16.msra.mxu1 %v3279_v53  ;;  %2004 = vmatpush1.msra.mxu0 %v1885_v52  ;;  %v1940_v52 = vld [vmem:[#allocation2 + $0x158] sm:$0xff]  ;;  %v1929_v53 = vld [vmem:[#allocation2 + $0x100] sm:$0xff] }
 0x50e   : > { %3284 = vmatprep.subr.bf16.mxu0 %v3283_v54  ;;  %3081 = vmatmul.mubr.msk.f32.vlgmr.msra.gmra.mrb[6].mxu0 %vm1980_vm15, %v4020_v48  ;;  %v3291_v48 = vpack.c.bf16 %v1913_v59, %v1910_v63  ;;  %v3311_v54 = vpack.c.bf16 %v1943_v37, %v1940_v52  ;;  %v3335_v56 = vpack.c.bf16 %v1932_v50, %v1929_v53 }
 0x50f   : > { %3286 = vmatpush1.bf16.msra.mxu0 %v3285_v21  ;;  %2057 = vmatprep.mubr.f32.mxu0 %v3455_v16  ;;  %v1905_v16 = vld [vmem:[#allocation2 + $0x40] sm:$0xff]  ;;  %v1939_v21 = vld [vmem:[#allocation2 + $0x150] sm:$0xff] }
 0x510   : > { %3288 = vmatprep.subr.bf16.mxu0 %v3287_v57  ;;  %v3323_v8 = vpack.c.bf16 %v1908_v41, %v1905_v16  ;;  %v3313_v39 = vpack.c.bf16 %v1942_v55, %v1939_v21  ;;  %v1946_v57 = vld [vmem:[#allocation2 + $0x188] sm:$0xff]  ;;  %v1896_v16 = vld [vmem:[%s4317_s6 + $0x18] sm:$0xff]  ;;  %v1947_v41 = vld [vmem:[#allocation2 + $0x190] sm:$0xff] }
 0x511   : > { %v1979_v60 = vld [vmem:[#allocation4 + $0xd0] sm:$0xff]  ;;  %v3315_v59 = vpack.c.bf16 %v1949_v20, %v1946_v57 }
 0x512   : > { %3120 = vmatprep.subr.mxu1 %v1979_v60  ;;  %3082 = vmatmul.mubr.msk.f32.gmra.mrb[8].mxu0 %vm1980_vm15, %v1952_v61 }
 0x513   : > { %3121 = vmatpush3.msra.mxu1 %v1979_v60  ;;  %3290 = vmatpush1.bf16.msra.mxu0 %v3289_v62  ;;  %v1945_v60 = vld [vmem:[#allocation2 + $0x180] sm:$0xff]  ;;  %v1944_v62 = vld [vmem:[#allocation2 + $0x178] sm:$0xff] }
 0x514   : > { %3319 = vmatprep.subr.bf16.mxu1 %v3445_v0  ;;  %3123 = vmatmul.mubr.msk.f32.vlgmr.msra.gmra.mrb[6].mxu1 %vm1980_vm15, %v1952_v61  ;;  %v1948_v61 = vld [vmem:[#allocation2 + $0x198] sm:$0xff]  ;;  %v3341_v22 = vpack.c.bf16 %v1944_v62, %v1941_v1  ;;  %v2700_v1 = vld [vmem:[%s4320_s9 + $0x8] sm:$0x3f] }
 0x515   : > { %3321 = vmatpush1.bf16.msra.mxu1 %v3320_v24  ;;  %3292 = vmatprep.subr.bf16.mxu0 %v3291_v48  ;;  %v3338_v24 = vpack.c.bf16 %v1938_v38, %v1935_v58  ;;  %v3317_v63 = vpack.c.bf16 %v1948_v61, %v1945_v60  ;;  %v1893_v48 = vld [vmem:[%s4317_s6] sm:$0xff] }
 0x516   : > { %3322 = vmatprep.subr.bf16.mxu1 %v3445_v0  ;;  %3087 = vmatprep.mubr.msk.f32.mxu1 %vm933_vm1, %v1894_v2 }
 0x517   : > { %3294 = vmatpush1.bf16.msra.mxu0 %v3293_v3  ;;  %3085 = vmatprep.mubr.msk.f32.mxu0 %vm933_vm1, %v1894_v2  ;;  %v3344_v2 = vpack.c.bf16 %v1950_v40, %v1947_v41  ;;  %v1895_v3 = vld [vmem:[%s4317_s6 + $0x10] sm:$0xff] }
 0x518   : > { %3296 = vmatprep.subr.bf16.mxu0 %v3295_v5 }
 0x519   : > { %3324 = vmatpush1.bf16.msra.mxu1 %v3323_v8 }
 0x51a   : > { %3325 = vmatprep.subr.bf16.mxu1 %v3445_v0  ;;  %v2302_v6 = vpop.permute.xlu1 %2301  ;;  %v2307_v11 = vpop.permute.xlu0 %2306 }
 0x51b   : > { %3298 = vmatpush1.bf16.msra.mxu0 %v3297_v10 }
 0x51c   : > { %3300 = vmatprep.subr.bf16.mxu0 %v3299_v42 }
 0x51d   : > { %3327 = vmatpush1.bf16.msra.mxu1 %v3326_v27 }
 0x51e   : > { %3328 = vmatprep.subr.bf16.mxu1 %v3445_v0 }
 0x51f   : > { %3302 = vmatpush1.bf16.msra.mxu0 %v3301_v30 }
 0x520   : > { %3304 = vmatprep.subr.bf16.mxu0 %v3303_v33 }
 0x521   : > { %3330 = vmatpush1.bf16.msra.mxu1 %v3329_v34 }
 0x522   : > { %3331 = vmatprep.subr.bf16.mxu1 %v3445_v0 }
 0x523   : > { %3306 = vmatpush1.bf16.msra.mxu0 %v3305_v45 }
 0x524   : > { %3308 = vmatprep.subr.bf16.mxu0 %v3307_v19 }
 0x525   : > { %3333 = vmatpush1.bf16.msra.mxu1 %v3332_v36 }
 0x526   : > { %3334 = vmatprep.subr.bf16.mxu1 %v3445_v0 }
 0x527   : > { %3310 = vmatpush1.bf16.msra.mxu0 %v3309_v51 }
 0x528   : > { %3312 = vmatprep.subr.bf16.mxu0 %v3311_v54 }
 0x529   : > { %3336 = vmatpush1.bf16.msra.mxu1 %v3335_v56 }
 0x52a   : > { %3337 = vmatprep.subr.bf16.mxu1 %v3445_v0 }
 0x52b   : > { %3314 = vmatpush1.bf16.msra.mxu0 %v3313_v39 }
 0x52c   : > { %3316 = vmatprep.subr.bf16.mxu0 %v3315_v59 }
 0x52d   : > { %3339 = vmatpush1.bf16.msra.mxu1 %v3338_v24 }
 0x52e   : > { %3340 = vmatprep.subr.bf16.mxu1 %v3445_v0 }
 0x52f   : > { %3318 = vmatpush1.bf16.msra.mxu0 %v3317_v63  ;;  %v2755_v63 = vld [vmem:[%s4321_s10] sm:$0x3f] }
 0x531   : > { %3342 = vmatpush1.bf16.msra.mxu1 %v3341_v22 }
 0x532   : > { %3343 = vmatprep.subr.bf16.mxu1 %v3445_v0  ;;  %2210 = vmatmul.mubr.f32.vlgmr.msra.gmra.mrb[6].mxu0 %v1893_v48 }
 0x533   : > { %3086 = vmatprep.mubr.msk.f32.mxu0 %vm933_vm1, %v1896_v16 }
 0x535   : > { %3345 = vmatpush1.bf16.msra.mxu1 %v3344_v2 }
 0x536   : > { %2216 = vmatmul.mubr.f32.gmra.mrb[8].mxu0 %v1895_v3  ;;  %3382 = vmatprep.subr.bf16.mxu1 %v3445_v0 }
 0x537   : > { %3089 = vmatprep.mubr.msk.f32.mxu0 %vm933_vm1, %v2700_v1 }
 0x538   : > { %2287 = vmatmul.mubr.f32.vlgmr.msra.gmra.mrb[8].mxu1 %v1893_v48 }
 0x539   : > { %3088 = vmatprep.mubr.msk.f32.mxu1 %vm933_vm1, %v1896_v16 }
 0x53c   : > { %2292 = vmatmul.mubr.f32.gmra.mrb[10].mxu1 %v1895_v3 }
 0x53d   : > { %3090 = vmatprep.mubr.msk.f32.mxu1 %vm933_vm1, %v2700_v1 }
 0x5e7   : > { %v3124_v4 = vpop.f32.mrb[6].mxu1 }
 0x5e8   : > { %v2130_v5 = vpop.f32.mrb[7].mxu1 }
 0x605   : > { %v2211_v7 = vpop.f32.mrb[6].mxu0 }
 0x606   : > { %v2309_v8 = vadd.f32 %v2302_v6, %v2211_v7  ;;  %v2213_v25 = vpop.f32.mrb[7].mxu0 }
 0x607   : > { %v2310_v9 = vadd.f32 %v2302_v6, %v2213_v25 }
 0x608   : > { %v2315_v10 = vmax.f32 %v2309_v8, 0.0 }
 0x609   : > { %v2316_v12 = vmax.f32 %v2310_v9, 0.0  ;;  %v2217_v42 = vpop.f32.mrb[8].mxu0 }
 0x60a   : > { %v2321_v13 = vmul.f32 %v2315_v10, %v3763_v23  ;;  %v2312_v14 = vadd.f32 %v2307_v11, %v2217_v42  ;;  %v2219_v27 = vpop.f32.mrb[9].mxu0 }
 0x60b   : > { %v2288_v28 = vpop.f32.mrb[8].mxu1  ;;  %v2322_v29 = vmul.f32 %v2316_v12, %v3765_v26  ;;  %v2313_v30 = vadd.f32 %v2307_v11, %v2219_v27 }
 0x60c   : > { %v2289_v32 = vadd.f32 %v2288_v28, %v2130_v5  ;;  %2327 = vst [vmem:[%s4096_s24] sm:$0xff] %v2321_v13  ;;  %v2290_v17 = vpop.f32.mrb[9].mxu1  ;;  %v2318_v33 = vmax.f32 %v2312_v14, 0.0  ;;  %2339 = vrot.lane.b32.xlu1 %v2321_v13, %s3456_s27 }
 0x60d   : > { %2328 = vst [vmem:[%s4096_s24 + $0x8] sm:$0xff] %v2322_v29  ;;  %v2319_v43 = vmax.f32 %v2313_v30, 0.0  ;;  %2341 = vrot.lane.b32.xlu0 %v2322_v29, %s3456_s27 }
 0x60e   : > { %v2311_v15 = vadd.f32 %v2302_v6, %v2289_v32  ;;  %v2324_v34 = vmul.f32 %v2318_v33, %v3763_v23 }
 0x60f   : > { %v2293_v35 = vpop.f32.mrb[10].mxu1  ;;  %v2325_v44 = vmul.f32 %v2319_v43, %v3765_v26 }
 0x610   : > { %v2317_v45 = vmax.f32 %v2311_v15, 0.0  ;;  %v2294_v46 = vadd.f32 %v3124_v4, %v2293_v35  ;;  %2330 = vst [vmem:[%s4096_s24 + $0x18] sm:$0xff] %v2324_v34  ;;  %v2295_v47 = vpop.f32.mrb[11].mxu1 }
 0x611   : > { %2331 = vst [vmem:[%s4096_s24 + $0x20] sm:$0xff] %v2325_v44  ;;  %2345 = vrot.lane.b32.xlu0 %v2324_v34, %s3456_s27 }
 0x612   : > { %v2323_v19 = vmul.f32 %v2317_v45, %v3771_v31  ;;  %v2314_v49 = vadd.f32 %v2307_v11, %v2294_v46 }
 0x614   : > { %2329 = vst.msk [vmem:[%s4096_s24 + $0x10] sm:$0xff] %vm530_vm0, %v2323_v19  ;;  %v2320_v18 = vmax.f32 %v2314_v49, 0.0  ;;  %2343 = vrot.lane.b32.xlu1 %v2323_v19, %s3456_s27 }
 0x616   : > { %v2326_v36 = vmul.f32 %v2320_v18, %v3771_v31 }
 0x618   : > { %2332 = vst.msk [vmem:[%s4096_s24 + $0x28] sm:$0xff] %vm530_vm0, %v2326_v36  ;;  %2347 = vrot.lane.b32.xlu1 %v2325_v44, %s3456_s27  ;;  %2349 = vrot.lane.b32.xlu0 %v2326_v36, %s3456_s27  ;;  %s4341_s27 = smov 92  }
 0x67e   : > { %v2340_v37 = vpop.permute.xlu1 %2339 }
 0x67f   : > { %2361 = vst.msk [vmem:[#allocation7] sm:$0xff] %vm1155_vm13, %v2340_v37  ;;  %v2342_v50 = vpop.permute.xlu0 %2341 }
 0x680   : > { %v2351_v51 = vsel %vm1144_vm11, %v2340_v37, %v2342_v50 }
 0x683   : > { %v2346_v52 = vpop.permute.xlu0 %2345 }
 0x684   : > { %2364 = vst.msk [vmem:[#allocation7 + $0x18] sm:$0xff] %vm1155_vm13, %v2346_v52 }
 0x686   : > { %v4121_v53 = vld [vmem:[#allocation7] sm:$0xff]  ;;  %v2344_v54 = vpop.permute.xlu1 %2343 }
 0x687   : > { %v2352_v21 = vsel %vm1144_vm11, %v2342_v50, %v2344_v54  ;;  %2391 = vrot.lane.b32.xlu1 %v4121_v53, %s3446_s19 }
 0x688   : > { %2363 = vst.msk [vmem:[#allocation7 + $0x10] sm:$0xff] %vm1158_vm12, %v2352_v21 }
 0x68a   : > { %v2348_v55 = vpop.permute.xlu1 %2347  ;;  %v2350_v56 = vpop.permute.xlu0 %2349 }
 0x68b   : > { %v4127_v20 = vld [vmem:[#allocation7 + $0x18] sm:$0xff]  ;;  %v2353_v38 = vsel %vm1144_vm11, %v2346_v52, %v2348_v55  ;;  %v2354_v39 = vsel %vm1144_vm11, %v2348_v55, %v2350_v56  ;;  %2431 = vrot.lane.b32.xlu1 %v4121_v53, %s3447_s20 }
 0x68c   : > { %2366 = vst.msk [vmem:[#allocation7 + $0x28] sm:$0xff] %vm1158_vm12, %v2354_v39  ;;  %v3346_v57 = vpack.c.bf16 %v2353_v38, %v2351_v51  ;;  %v3348_v58 = vpack.c.bf16 %v4127_v20, %v4121_v53 }
 0x68e   : > { %3347 = vmatprep.subr.bf16.mxu0 %v3346_v57 }
 0x68f   : > { %v2369_v59 = vld [vmem:[#allocation7 + $0x10] sm:$0xff]  ;;  %2471 = vrot.lane.b32.xlu1 %v4121_v53, %s3448_s21  ;;  %3349 = vmatpush1.bf16.msra.mxu0 %v3348_v58 }
 0x690   : > { %2375 = vst.msk [vmem:[#allocation3 + $0x10] sm:$0xff] %vm530_vm0, %v2369_v59  ;;  %2395 = vrot.lane.b32.xlu0 %v2369_v59, %s3446_s19 }
 0x693   : > { %v2372_v60 = vld [vmem:[#allocation7 + $0x28] sm:$0xff]  ;;  %2511 = vrot.lane.b32.xlu1 %v4121_v53, %s4340_s15 }
 0x694   : > { %2378 = vst.msk [vmem:[#allocation3 + $0x28] sm:$0xff] %vm530_vm0, %v2372_v60  ;;  %2435 = vrot.lane.b32.xlu0 %v2369_v59, %s3447_s20 }
 0x697   : > { %2551 = vrot.lane.b32.xlu1 %v4121_v53, %s4338_s23  ;;  %v2703_v61 = vld [vmem:[#allocation3 + $0x10] sm:$0xff] }
 0x698   : > { %2475 = vrot.lane.b32.xlu0 %v2369_v59, %s3448_s21 }
 0x69b   : > { %2591 = vrot.lane.b32.xlu1 %v4121_v53, %s4341_s27  ;;  %v2706_v24 = vld [vmem:[#allocation3 + $0x28] sm:$0xff] }
 0x69c   : > { %2515 = vrot.lane.b32.xlu0 %v2369_v59, %s4340_s15  ;;  %v3383_v62 = vpack.c.bf16 %v2706_v24, %v2703_v61 }
 0x69e   : > { %3384 = vmatpush1.bf16.msra.mxu1 %v3383_v62 }
 0x69f   : > { %2631 = vrot.lane.b32.xlu1 %v4121_v53, %s4339_s25  ;;  %3385 = vmatprep.subr.bf16.mxu1 %v3445_v0 }
 0x6a0   : > { %2555 = vrot.lane.b32.xlu0 %v2369_v59, %s4338_s23 }
 0x6a3   : > { %2393 = vrot.lane.b32.xlu1 %v2351_v51, %s3446_s19 }
 0x6a4   : > { %2595 = vrot.lane.b32.xlu0 %v2369_v59, %s4341_s27 }
 0x6a7   : > { %2433 = vrot.lane.b32.xlu1 %v2351_v51, %s3447_s20 }
 0x6a8   : > { %2635 = vrot.lane.b32.xlu0 %v2369_v59, %s4339_s25 }
 0x6ab   : > { %2473 = vrot.lane.b32.xlu1 %v2351_v51, %s3448_s21 }
 0x6ac   : > { %2675 = vrot.lane.b32.xlu0 %v2369_v59, %s4337_s26 }
 0x6af   : > { %2513 = vrot.lane.b32.xlu1 %v2351_v51, %s4340_s15 }
 0x6b0   : > { %2397 = vrot.lane.b32.xlu0 %v4127_v20, %s3446_s19 }
 0x6b3   : > { %2553 = vrot.lane.b32.xlu1 %v2351_v51, %s4338_s23 }
 0x6b4   : > { %2437 = vrot.lane.b32.xlu0 %v4127_v20, %s3447_s20 }
 0x6b7   : > { %2593 = vrot.lane.b32.xlu1 %v2351_v51, %s4341_s27 }
 0x6b8   : > { %2477 = vrot.lane.b32.xlu0 %v4127_v20, %s3448_s21 }
 0x6bb   : > { %2633 = vrot.lane.b32.xlu1 %v2351_v51, %s4339_s25 }
 0x6bc   : > { %2517 = vrot.lane.b32.xlu0 %v4127_v20, %s4340_s15 }
 0x6bf   : > { %2673 = vrot.lane.b32.xlu1 %v2351_v51, %s4337_s26 }
 0x6c0   : > { %2557 = vrot.lane.b32.xlu0 %v4127_v20, %s4338_s23 }
 0x6c3   : > { %2399 = vrot.lane.b32.xlu1 %v2353_v38, %s3446_s19 }
 0x6c4   : > { %2597 = vrot.lane.b32.xlu0 %v4127_v20, %s4341_s27 }
 0x6c7   : > { %2439 = vrot.lane.b32.xlu1 %v2353_v38, %s3447_s20 }
 0x6c8   : > { %2637 = vrot.lane.b32.xlu0 %v4127_v20, %s4339_s25 }
 0x6cb   : > { %2479 = vrot.lane.b32.xlu1 %v2353_v38, %s3448_s21 }
 0x6cc   : > { %2401 = vrot.lane.b32.xlu0 %v2372_v60, %s3446_s19 }
 0x6cf   : > { %2519 = vrot.lane.b32.xlu1 %v2353_v38, %s4340_s15 }
 0x6d0   : > { %2441 = vrot.lane.b32.xlu0 %v2372_v60, %s3447_s20 }
 0x6d3   : > { %2559 = vrot.lane.b32.xlu1 %v2353_v38, %s4338_s23 }
 0x6d4   : > { %2481 = vrot.lane.b32.xlu0 %v2372_v60, %s3448_s21 }
 0x6d7   : > { %2599 = vrot.lane.b32.xlu1 %v2353_v38, %s4341_s27 }
 0x6d8   : > { %2521 = vrot.lane.b32.xlu0 %v2372_v60, %s4340_s15 }
 0x6db   : > { %2639 = vrot.lane.b32.xlu1 %v2353_v38, %s4339_s25 }
 0x6dc   : > { %2561 = vrot.lane.b32.xlu0 %v2372_v60, %s4338_s23 }
 0x6df   : > { %2679 = vrot.lane.b32.xlu1 %v2353_v38, %s4337_s26 }
 0x6e0   : > { %2601 = vrot.lane.b32.xlu0 %v2372_v60, %s4341_s27 }
 0x6e3   : > { %2671 = vrot.lane.b32.xlu1 %v4121_v53, %s4337_s26 }
 0x6e4   : > { %2641 = vrot.lane.b32.xlu0 %v2372_v60, %s4339_s25  ;;  %s4342_s25 = smul.u32 24, %s4344_s30 }
 0x6e6   : > { %s489_s22 = scalar_lea.vmem %s4322_s11, %s4342_s25 }
 0x6e7   : > { %2758 = vperm.xlu1 %3436, %v2755_v63  }
 0x6e8   : > { %2681 = vrot.lane.b32.xlu0 %v2372_v60, %s4337_s26 }
 0x6ec   : > { %2677 = vrot.lane.b32.xlu0 %v4127_v20, %s4337_s26 }
 0x6f9   : > { %v2392_v22 = vpop.permute.xlu1 %2391 }
 0x6fd   : > { %v2432_v48 = vpop.permute.xlu1 %2431 }
 0x701   : > { %v2472_v40 = vpop.permute.xlu1 %2471 }
 0x702   : > { %v2396_v16 = vpop.permute.xlu0 %2395 }
 0x703   : > { %2415 = vst.msk [vmem:[#allocation3 + $0x40] sm:$0xff] %vm530_vm0, %v2396_v16 }
 0x705   : > { %v2512_v41 = vpop.permute.xlu1 %2511 }
 0x706   : > { %v2436_v2 = vpop.permute.xlu0 %2435 }
 0x707   : > { %2455 = vst.msk [vmem:[#allocation3 + $0x70] sm:$0xff] %vm530_vm0, %v2436_v2 }
 0x709   : > { %v2552_v3 = vpop.permute.xlu1 %2551 }
 0x70a   : > { %v2476_v4 = vpop.permute.xlu0 %2475 }
 0x70b   : > { %2495 = vst.msk [vmem:[#allocation3 + $0xa0] sm:$0xff] %vm530_vm0, %v2476_v4 }
 0x70d   : > { %v2592_v5 = vpop.permute.xlu1 %2591 }
 0x70e   : > { %v2516_v6 = vpop.permute.xlu0 %2515 }
 0x70f   : > { %2535 = vst.msk [vmem:[#allocation3 + $0xd0] sm:$0xff] %vm530_vm0, %v2516_v6 }
 0x711   : > { %v2632_v7 = vpop.permute.xlu1 %2631 }
 0x712   : > { %v2556_v8 = vpop.permute.xlu0 %2555 }
 0x713   : > { %2575 = vst.msk [vmem:[#allocation3 + $0x100] sm:$0xff] %vm530_vm0, %v2556_v8 }
 0x715   : > { %v2394_v25 = vpop.permute.xlu1 %2393 }
 0x716   : > { %v2596_v9 = vpop.permute.xlu0 %2595  ;;  %v2403_v10 = vsel %vm559_vm2, %v2392_v22, %v2394_v25  ;;  %v2404_v11 = vsel %vm559_vm2, %v2394_v25, %v2396_v16 }
 0x717   : > { %2615 = vst.msk [vmem:[#allocation3 + $0x130] sm:$0xff] %vm530_vm0, %v2596_v9 }
 0x719   : > { %v2434_v12 = vpop.permute.xlu1 %2433 }
 0x71a   : > { %v2636_v42 = vpop.permute.xlu0 %2635  ;;  %v2443_v13 = vsel %vm600_vm3, %v2432_v48, %v2434_v12  ;;  %v2444_v14 = vsel %vm600_vm3, %v2434_v12, %v2436_v2 }
 0x71b   : > { %2655 = vst.msk [vmem:[#allocation3 + $0x160] sm:$0xff] %vm530_vm0, %v2636_v42 }
 0x71d   : > { %v2474_v27 = vpop.permute.xlu1 %2473 }
 0x71e   : > { %v2676_v28 = vpop.permute.xlu0 %2675  ;;  %v4219_v29 = vsel %vm641_vm4, %v2472_v40, %v2474_v27  ;;  %v2484_v30 = vsel %vm641_vm4, %v2474_v27, %v2476_v4 }
 0x71f   : > { %2695 = vst.msk [vmem:[#allocation3 + $0x190] sm:$0xff] %vm530_vm0, %v2676_v28 }
 0x721   : > { %v2514_v32 = vpop.permute.xlu1 %2513 }
 0x722   : > { %v2398_v17 = vpop.permute.xlu0 %2397  ;;  %v4224_v33 = vsel %vm682_vm5, %v2512_v41, %v2514_v32  ;;  %v4227_v43 = vsel %vm682_vm5, %v2514_v32, %v2516_v6  ;;  %v2709_v41 = vld [vmem:[#allocation3 + $0x40] sm:$0xff] }
 0x725   : > { %v2554_v15 = vpop.permute.xlu1 %2553 }
 0x726   : > { %v2438_v34 = vpop.permute.xlu0 %2437  ;;  %v4230_v35 = vsel %vm723_vm6, %v2552_v3, %v2554_v15  ;;  %v4233_v44 = vsel %vm723_vm6, %v2554_v15, %v2556_v8 }
 0x729   : > { %v2594_v45 = vpop.permute.xlu1 %2593 }
 0x72a   : > { %v2478_v46 = vpop.permute.xlu0 %2477  ;;  %v4236_v47 = vsel %vm764_vm7, %v2592_v5, %v2594_v45  ;;  %v4239_v19 = vsel %vm764_vm7, %v2594_v45, %v2596_v9  ;;  %v2715_v9 = vld [vmem:[#allocation3 + $0x70] sm:$0xff] }
 0x72b   : > { %v2727_v45 = vld [vmem:[#allocation3 + $0xd0] sm:$0xff] }
 0x72d   : > { %v2634_v49 = vpop.permute.xlu1 %2633 }
 0x72e   : > { %v2518_v18 = vpop.permute.xlu0 %2517  ;;  %v4242_v36 = vsel %vm805_vm8, %v2632_v7, %v2634_v49  ;;  %v4245_v37 = vsel %vm805_vm8, %v2634_v49, %v2636_v42 }
 0x731   : > { %v4247_v50 = vpop.permute.xlu1 %2673 }
 0x732   : > { %v2558_v51 = vpop.permute.xlu0 %2557  ;;  %v4251_v52 = vsel %vm846_vm9, %v4247_v50, %v2676_v28 }
 0x735   : > { %v2400_v53 = vpop.permute.xlu1 %2399 }
 0x736   : > { %v2598_v54 = vpop.permute.xlu0 %2597  ;;  %v2405_v21 = vsel %vm559_vm2, %v2398_v17, %v2400_v53 }
 0x737   : > { %v3352_v61 = vpack.c.bf16 %v2405_v21, %v2403_v10  ;;  %v2733_v21 = vld [vmem:[#allocation3 + $0x100] sm:$0xff] }
 0x739   : > { %v2440_v55 = vpop.permute.xlu1 %2439 }
 0x73a   : > { %v2638_v56 = vpop.permute.xlu0 %2637  ;;  %v2445_v20 = vsel %vm600_vm3, %v2438_v34, %v2440_v55 }
 0x73b   : > { %v3356_v48 = vpack.c.bf16 %v2445_v20, %v2443_v13 }
 0x73d   : > { %v2480_v38 = vpop.permute.xlu1 %2479 }
 0x73e   : > { %v2402_v39 = vpop.permute.xlu0 %2401  ;;  %v2485_v57 = vsel %vm641_vm4, %v2478_v46, %v2480_v38 }
 0x73f   : > { %v2406_v58 = vsel %vm559_vm2, %v2400_v53, %v2402_v39  ;;  %2418 = vst.msk [vmem:[#allocation3 + $0x58] sm:$0xff] %vm530_vm0, %v2402_v39  ;;  %v3360_v7 = vpack.c.bf16 %v2485_v57, %v4219_v29  ;;  %v2721_v29 = vld [vmem:[#allocation3 + $0xa0] sm:$0xff]  ;;  %v2739_v39 = vld [vmem:[#allocation3 + $0x130] sm:$0xff] }
 0x740   : > { %v3350_v59 = vpack.c.bf16 %v2406_v58, %v2404_v11 }
 0x741   : > { %v2520_v60 = vpop.permute.xlu1 %2519 }
 0x742   : > { %v2442_v24 = vpop.permute.xlu0 %2441  ;;  %v2525_v62 = vsel %vm682_vm5, %v2518_v18, %v2520_v60  ;;  %3351 = vmatprep.subr.bf16.mxu0 %v3350_v59 }
 0x743   : > { %v2446_v63 = vsel %vm600_vm3, %v2440_v55, %v2442_v24  ;;  %2458 = vst.msk [vmem:[#allocation3 + $0x88] sm:$0xff] %vm530_vm0, %v2442_v24  ;;  %3353 = vmatpush1.bf16.msra.mxu0 %v3352_v61 }
 0x744   : > { %v3354_v1 = vpack.c.bf16 %v2446_v63, %v2444_v14  ;;  %v3364_v14 = vpack.c.bf16 %v2525_v62, %v4224_v33  ;;  %v2751_v63 = vld [vmem:[#allocation3 + $0x190] sm:$0xff] }
 0x745   : > { %v2560_v22 = vpop.permute.xlu1 %2559 }
 0x746   : > { %v2482_v40 = vpop.permute.xlu0 %2481  ;;  %v2565_v16 = vsel %vm723_vm6, %v2558_v51, %v2560_v22  ;;  %v2712_v2 = vld [vmem:[#allocation3 + $0x58] sm:$0xff]  ;;  %3355 = vmatprep.subr.bf16.mxu0 %v3354_v1 }
 0x747   : > { %v2486_v3 = vsel %vm641_vm4, %v2480_v38, %v2482_v40  ;;  %2498 = vst.msk [vmem:[#allocation3 + $0xb8] sm:$0xff] %vm530_vm0, %v2482_v40  ;;  %v3386_v4 = vpack.c.bf16 %v2712_v2, %v2709_v41  ;;  %3357 = vmatpush1.bf16.msra.mxu0 %v3356_v48  ;;  %v3368_v33 = vpack.c.bf16 %v2565_v16, %v4230_v35 }
 0x748   : > { %v3358_v5 = vpack.c.bf16 %v2486_v3, %v2484_v30 }
 0x749   : > { %3387 = vmatpush1.bf16.msra.mxu1 %v3386_v4  ;;  %v2600_v6 = vpop.permute.xlu1 %2599 }
 0x74a   : > { %v2522_v8 = vpop.permute.xlu0 %2521  ;;  %3388 = vmatprep.subr.bf16.mxu1 %v3445_v0  ;;  %v2605_v25 = vsel %vm764_vm7, %v2598_v54, %v2600_v6  ;;  %v2718_v10 = vld [vmem:[#allocation3 + $0x88] sm:$0xff]  ;;  %3359 = vmatprep.subr.bf16.mxu0 %v3358_v5 }
 0x74b   : > { %v2526_v11 = vsel %vm682_vm5, %v2520_v60, %v2522_v8  ;;  %2538 = vst.msk [vmem:[#allocation3 + $0xe8] sm:$0xff] %vm530_vm0, %v2522_v8  ;;  %v3389_v12 = vpack.c.bf16 %v2718_v10, %v2715_v9  ;;  %3361 = vmatpush1.bf16.msra.mxu0 %v3360_v7  ;;  %v3372_v53 = vpack.c.bf16 %v2605_v25, %v4236_v47 }
 0x74c   : > { %v3362_v42 = vpack.c.bf16 %v2526_v11, %v4227_v43 }
 0x74d   : > { %3390 = vmatpush1.bf16.msra.mxu1 %v3389_v12  ;;  %v2640_v13 = vpop.permute.xlu1 %2639 }
 0x74e   : > { %v2562_v27 = vpop.permute.xlu0 %2561  ;;  %3391 = vmatprep.subr.bf16.mxu1 %v3445_v0  ;;  %v2645_v28 = vsel %vm805_vm8, %v2638_v56, %v2640_v13  ;;  %v2724_v30 = vld [vmem:[#allocation3 + $0xb8] sm:$0xff]  ;;  %3363 = vmatprep.subr.bf16.mxu0 %v3362_v42 }
 0x74f   : > { %v2566_v32 = vsel %vm723_vm6, %v2560_v22, %v2562_v27  ;;  %2578 = vst.msk [vmem:[#allocation3 + $0x118] sm:$0xff] %vm530_vm0, %v2562_v27  ;;  %v3392_v17 = vpack.c.bf16 %v2724_v30, %v2721_v29  ;;  %3365 = vmatpush1.bf16.msra.mxu0 %v3364_v14  ;;  %v3376_v47 = vpack.c.bf16 %v2645_v28, %v4242_v36 }
 0x750   : > { %v3366_v43 = vpack.c.bf16 %v2566_v32, %v4233_v44 }
 0x751   : > { %3393 = vmatpush1.bf16.msra.mxu1 %v3392_v17  ;;  %v2680_v15 = vpop.permute.xlu1 %2679 }
 0x752   : > { %v2602_v34 = vpop.permute.xlu0 %2601  ;;  %3394 = vmatprep.subr.bf16.mxu1 %v3445_v0  ;;  %v2730_v46 = vld [vmem:[#allocation3 + $0xe8] sm:$0xff]  ;;  %3367 = vmatprep.subr.bf16.mxu0 %v3366_v43 }
 0x753   : > { %v2606_v49 = vsel %vm764_vm7, %v2600_v6, %v2602_v34  ;;  %2618 = vst.msk [vmem:[#allocation3 + $0x148] sm:$0xff] %vm530_vm0, %v2602_v34  ;;  %v3395_v18 = vpack.c.bf16 %v2730_v46, %v2727_v45  ;;  %3369 = vmatpush1.bf16.msra.mxu0 %v3368_v33 }
 0x754   : > { %v3370_v51 = vpack.c.bf16 %v2606_v49, %v4239_v19 }
 0x755   : > { %3396 = vmatpush1.bf16.msra.mxu1 %v3395_v18  ;;  %v2672_v44 = vpop.permute.xlu1 %2671 }
 0x756   : > { %v2642_v54 = vpop.permute.xlu0 %2641  ;;  %3397 = vmatprep.subr.bf16.mxu1 %v3445_v0  ;;  %v2683_v35 = vsel %vm846_vm9, %v2672_v44, %v4247_v50  ;;  %v2736_v55 = vld [vmem:[#allocation3 + $0x118] sm:$0xff]  ;;  %3371 = vmatprep.subr.bf16.mxu0 %v3370_v51 }
 0x757   : > { %v2646_v56 = vsel %vm805_vm8, %v2640_v13, %v2642_v54  ;;  %2658 = vst.msk [vmem:[#allocation3 + $0x178] sm:$0xff] %vm530_vm0, %v2642_v54  ;;  %v3398_v20 = vpack.c.bf16 %v2736_v55, %v2733_v21  ;;  %3373 = vmatpush1.bf16.msra.mxu0 %v3372_v53 }
 0x758   : > { %v3374_v19 = vpack.c.bf16 %v2646_v56, %v4245_v37  ;;  %v2745_v37 = vld [vmem:[#allocation3 + $0x160] sm:$0xff] }
 0x759   : > { %3399 = vmatpush1.bf16.msra.mxu1 %v3398_v20 }
 0x75a   : > { %v2682_v38 = vpop.permute.xlu0 %2681  ;;  %3400 = vmatprep.subr.bf16.mxu1 %v3445_v0  ;;  %v2742_v57 = vld [vmem:[#allocation3 + $0x148] sm:$0xff]  ;;  %3375 = vmatprep.subr.bf16.mxu0 %v3374_v19 }
 0x75b   : > { %v2686_v50 = vsel %vm846_vm9, %v2680_v15, %v2682_v38  ;;  %2698 = vst.msk [vmem:[#allocation3 + $0x1a8] sm:$0xff] %vm530_vm0, %v2682_v38  ;;  %v3401_v58 = vpack.c.bf16 %v2742_v57, %v2739_v39  ;;  %3377 = vmatpush1.bf16.msra.mxu0 %v3376_v47 }
 0x75c   : > { %v3378_v59 = vpack.c.bf16 %v2686_v50, %v4251_v52  ;;  %v2699_v52 = vld [vmem:[%s4320_s9] sm:$0x3f] }
 0x75d   : > { %3402 = vmatpush1.bf16.msra.mxu1 %v3401_v58 }
 0x75e   : > { %v2678_v60 = vpop.permute.xlu0 %2677  ;;  %3403 = vmatprep.subr.bf16.mxu1 %v3445_v0  ;;  %v2748_v36 = vld [vmem:[#allocation3 + $0x178] sm:$0xff]  ;;  %3379 = vmatprep.subr.bf16.mxu0 %v3378_v59 }
 0x75f   : > { %v2685_v61 = vsel %vm846_vm9, %v2678_v60, %v2680_v15  ;;  %v3404_v24 = vpack.c.bf16 %v2748_v36, %v2745_v37 }
 0x760   : > { %v3380_v62 = vpack.c.bf16 %v2685_v61, %v2683_v35 }
 0x761   : > { %3405 = vmatpush1.bf16.msra.mxu1 %v3404_v24 }
 0x762   : > { %3406 = vmatprep.subr.bf16.mxu1 %v3445_v0  ;;  %v2754_v1 = vld [vmem:[#allocation3 + $0x1a8] sm:$0xff]  ;;  %3381 = vmatpush1.bf16.msra.mxu0 %v3380_v62 }
 0x763   : > { %v3407_v22 = vpack.c.bf16 %v2754_v1, %v2751_v63 }
 0x765   : > { %3408 = vmatpush1.bf16.msra.mxu1 %v3407_v22  ;;  %2829 = vmatmul.mubr.f32.vlgmr.msra.gmra.mrb[10].mxu0 %v2699_v52 }
 0x766   : > { %v2759_v48 = vpop.permute.xlu1 %2758 }
 0x768   : > { %2900 = vmatmul.mubr.f32.vlgmr.msra.gmra.mrb[12].mxu1 %v2699_v52 }
 0x838   : > { %v2830_v40 = vpop.f32.mrb[10].mxu0 }
 0x839   : > { %v2831_v16 = vadd.f32 %v2830_v40, %v2759_v48  ;;  %v2832_v41 = vpop.f32.mrb[11].mxu0 }
 0x83a   : > { %v2833_v0 = vadd.f32 %v2832_v41, %v2759_v48 }
 0x83b   : > { %v2901_v2 = vpop.f32.mrb[12].mxu1  ;;  %v2905_v3 = vmul.f32 %v2831_v16, %v3763_v23 }
 0x83c   : > { %v2902_v4 = vadd.f32 %v2901_v2, %v2759_v48  ;;  %v2906_v5 = vmul.f32 %v2833_v0, %v3765_v26  ;;  %v2903_v6 = vpop.f32.mrb[13].mxu1 }
 0x83d   : > { %2908 = vst [vmem:[%s489_s22] sm:$0x3f] %v2905_v3 }
 0x83e   : > { %v2907_v7 = vmul.f32 %v2902_v4, %v3771_v31  ;;  %2909 = vst [vmem:[%s489_s22 + $0x8] sm:$0x3f] %v2906_v5 }
 0x840   : > { %2910 = vst.msk [vmem:[%s489_s22 + $0x10] sm:$0x3f] %vm1706_vm14, %v2907_v7 }
 0x841 PF: > { %s25_s29 = sadd.s32 1, %s3443_s29  }
 0x842   : > { %p22_p4 = scmp.ge.s32.totalorder %s25_s29, 4  }
 0x844   :  { %24 = sbr.rel (!%p22_p4) target bundleno = 1 (0x1), region = 130 }

</bundles_post_ra>
